<compile_context>
chip_gen: v6e
topology: v6e:2x2x1
jax: 0.10.0
libtpu: 0.0.40
codegen_flags: <defaults>
</compile_context>

<pallas_src>
import functools

import jax
import jax.numpy as jnp
from jax import lax
from jax.experimental import pallas as pl
from jax.experimental.pallas import tpu as pltpu

NUM_BOND_DIRECTION = 3
NUM_BOND_TYPE = 6
NUM_ATOM_TYPE = 120
NUM_CHIRALITY_TAG = 3
BN_EPS = 1e-5

LANE = 128
SUBLANE = 8
MAX_EDGE_TILE = 512


def _round_up(x, m):
    return (x + m - 1) // m * m


def _pad_to(a, shape):
    pads = [(0, t - s) for s, t in zip(a.shape, shape)]
    return jnp.pad(a, pads)


# ----------------------------- Pallas kernel ------------------------------ #
def gin_layer_kernel(h_ref, src_ref, dst_ref, edge_emb_ref,
                     w1_ref, b1_ref, w2_ref, b2_ref, gamma_ref, beta_ref,
                     out_ref, acc_ref, *, n_nodes, apply_relu):
    k = pl.program_id(0)
    n_pad = acc_ref.shape[0]
    te = dst_ref.shape[1]

    @pl.when(k == 0)
    def _init():
        acc_ref[...] = jnp.zeros_like(acc_ref)

    # ---- per-edge-tile aggregation (every grid step) ------------------- #
    h_bf = h_ref[...].astype(jnp.bfloat16)                        # [N_pad, D_pad]

    # gather x_j = h[src] as a one-hot matmul on the MXU (bf16 in, f32 acc)
    iota_en = lax.broadcasted_iota(jnp.int32, (te, n_pad), 1)     # [TE, N_pad]
    onehot_src = (src_ref[...] == iota_en).astype(jnp.bfloat16)   # [TE, N_pad]
    x_src = jnp.dot(onehot_src, h_bf,
                    preferred_element_type=jnp.float32)           # [TE, D_pad] f32

    # message = x_j + edge_attr (padded edges are filtered by onehot_dst)
    msg = (x_src + edge_emb_ref[...]).astype(jnp.bfloat16)        # [TE, D_pad]

    # scatter-add by destination: agg[n] += sum_e 1[dst(e)==n] * msg[e]
    iota_ne = lax.broadcasted_iota(jnp.int32, (n_pad, te), 0)     # [N_pad, TE]
    onehot_dst = (dst_ref[...] == iota_ne).astype(jnp.bfloat16)   # [N_pad, TE]
    acc_ref[...] += jnp.dot(onehot_dst, msg,
                            preferred_element_type=jnp.float32)   # [N_pad, D_pad]

    # ---- MLP + BatchNorm once all edge tiles have been accumulated ----- #
    @pl.when(k == pl.num_programs(0) - 1)
    def _finalize():
        agg = acc_ref[...].astype(jnp.bfloat16)
        h1 = jnp.dot(agg, w1_ref[...].astype(jnp.bfloat16),
                     preferred_element_type=jnp.float32) + b1_ref[...]
        h1 = jnp.maximum(h1, 0.0)
        h2 = jnp.dot(h1.astype(jnp.bfloat16), w2_ref[...].astype(jnp.bfloat16),
                     preferred_element_type=jnp.float32) + b2_ref[...]

        # BatchNorm1d (training mode, biased variance) over the real nodes only
        row_ids = lax.broadcasted_iota(jnp.int32, (n_pad, 1), 0)
        row_mask = (row_ids < n_nodes).astype(jnp.float32)        # [N_pad, 1]
        inv_n = 1.0 / float(n_nodes)
        mean = jnp.sum(h2 * row_mask, axis=0, keepdims=True) * inv_n
        cen = (h2 - mean) * row_mask
        var = jnp.sum(cen * cen, axis=0, keepdims=True) * inv_n
        y = (h2 - mean) * lax.rsqrt(var + BN_EPS) * gamma_ref[...] + beta_ref[...]
        if apply_relu:                          # all layers except the last
            y = jnp.maximum(y, 0.0)
        # dropout with drop_ratio = 0 is a no-op
        out_ref[...] = y * row_mask             # padded node rows stay zero


def gin_layer(h, src_col, dst_row, edge_emb, w1, b1, w2, b2, gamma, beta,
              *, n_nodes, te, apply_relu):
    n_pad, d_pad = h.shape
    e_pad = dst_row.shape[1]
    h_dim_pad = w1.shape[1]
    grid = (e_pad // te,)

    kernel = functools.partial(gin_layer_kernel,
                               n_nodes=n_nodes, apply_relu=apply_relu)
    return pl.pallas_call(
        kernel,
        out_shape=jax.ShapeDtypeStruct((n_pad, d_pad), jnp.float32),
        grid=grid,
        in_specs=[
            pl.BlockSpec((n_pad, d_pad), lambda k: (0, 0)),      # h (VMEM-resident)
            pl.BlockSpec((te, 1), lambda k: (k, 0)),             # src (edge tile)
            pl.BlockSpec((1, te), lambda k: (0, k)),             # dst (lane-dense tile)
            pl.BlockSpec((te, d_pad), lambda k: (k, 0)),         # edge_emb (edge tile)
            pl.BlockSpec((d_pad, h_dim_pad), lambda k: (0, 0)),  # w1
            pl.BlockSpec((1, h_dim_pad), lambda k: (0, 0)),      # b1
            pl.BlockSpec((h_dim_pad, d_pad), lambda k: (0, 0)),  # w2
            pl.BlockSpec((1, d_pad), lambda k: (0, 0)),          # b2
            pl.BlockSpec((1, d_pad), lambda k: (0, 0)),          # gamma
            pl.BlockSpec((1, d_pad), lambda k: (0, 0)),          # beta
        ],
        out_specs=pl.BlockSpec((n_pad, d_pad), lambda k: (0, 0)),
        scratch_shapes=[pltpu.VMEM((n_pad, d_pad), jnp.float32)],
        compiler_params=pltpu.CompilerParams(
            dimension_semantics=("arbitrary",),           # edge-reduction axis
            vmem_limit_bytes=48 * 1024 * 1024),
    )(h, src_col, dst_row, edge_emb, w1, b1, w2, b2, gamma, beta)


# -------------------------- parameter construction ------------------------ #
def xavier_uniform(key, shape):
    fan_out, fan_in = shape[0], shape[1]
    bound = (6.0 / (fan_in + fan_out)) ** 0.5
    return jax.random.uniform(key, shape, jnp.float32, -bound, bound)


def linear_init(key, fan_in, fan_out):
    kw, kb = jax.random.split(key)
    bound = 1.0 / (fan_in ** 0.5)
    w = jax.random.uniform(kw, (fan_in, fan_out), jnp.float32, -bound, bound)
    b = jax.random.uniform(kb, (1, fan_out), jnp.float32, -bound, bound)
    return w, b


def init_params(key, num_layer, emb_dim):
    keys = jax.random.split(key, 2 + num_layer)
    params = {
        'x_emb1': xavier_uniform(keys[0], (NUM_ATOM_TYPE, emb_dim)),
        'x_emb2': xavier_uniform(keys[1], (NUM_CHIRALITY_TAG, emb_dim)),
        'layers': [],
    }
    for layer in range(num_layer):
        k = jax.random.split(keys[2 + layer], 4)
        w1, b1 = linear_init(k[0], emb_dim, 2 * emb_dim)
        w2, b2 = linear_init(k[1], 2 * emb_dim, emb_dim)
        params['layers'].append({
            'edge_emb1': xavier_uniform(k[2], (NUM_BOND_TYPE, emb_dim)),
            'edge_emb2': xavier_uniform(k[3], (NUM_BOND_DIRECTION, emb_dim)),
            'w1': w1, 'b1': b1, 'w2': w2, 'b2': b2,
            'gamma': jnp.ones((1, emb_dim), jnp.float32),   # BatchNorm1d weight
            'beta': jnp.zeros((1, emb_dim), jnp.float32),   # BatchNorm1d bias
        })
    return params


# ------------------------------ GNN forward ------------------------------- #
@functools.partial(jax.jit, static_argnames=("num_layer",))
def gnn_forward(params, x, edge_index, edge_attr, *, num_layer):
    n_nodes = x.shape[0]
    emb_dim = params['x_emb1'].shape[1]
    d_pad = _round_up(emb_dim, LANE)
    h_dim_pad = _round_up(2 * emb_dim, LANE)
    n_pad = _round_up(n_nodes, SUBLANE)

    # atom embedding (tiny-table lookups stay in plain JAX), padded & zeroed
    # TODO(synk): embedding-table gathers are left to XLA (tables are tiny).
    h0 = params['x_emb1'][x[:, 0]] + params['x_emb2'][x[:, 1]]   # [N, D]
    h = jnp.zeros((n_pad, d_pad), jnp.float32).at[:n_nodes, :emb_dim].set(h0)

    # add self loops (appended at the end), self-loop attr = [4, 0]
    self_idx = jnp.arange(n_nodes, dtype=jnp.int32)
    src = jnp.concatenate([edge_index[0].astype(jnp.int32), self_idx])
    dst = jnp.concatenate([edge_index[1].astype(jnp.int32), self_idx])
    self_attr = jnp.zeros((n_nodes, 2), edge_attr.dtype).at[:, 0].set(4)
    ea = jnp.concatenate([edge_attr, self_attr], axis=0)          # [E + N, 2]

    e_total = src.shape[0]
    te = min(MAX_EDGE_TILE, _round_up(e_total, LANE))
    e_pad = _round_up(e_total, te)

    # padded edges: dst = -1 (matches no node) so they contribute nothing
    src_p = jnp.zeros((e_pad,), jnp.int32).at[:e_total].set(src)
    dst_p = jnp.full((e_pad,), -1, jnp.int32).at[:e_total].set(dst)
    src_col = src_p.reshape(e_pad, 1)          # sublane-oriented (for x_j gather)
    dst_row = dst_p.reshape(1, e_pad)          # lane-dense (for scatter-add)

    for layer in range(num_layer):
        lp = params['layers'][layer]
        # edge embedding lookup from tiny tables (plain JAX), padded to lanes
        ee = lp['edge_emb1'][ea[:, 0]] + lp['edge_emb2'][ea[:, 1]]    # [E_total, D]
        edge_emb = jnp.zeros((e_pad, d_pad), jnp.float32)
        edge_emb = edge_emb.at[:e_total, :emb_dim].set(ee)

        w1 = _pad_to(lp['w1'], (d_pad, h_dim_pad))
        b1 = _pad_to(lp['b1'], (1, h_dim_pad))
        w2 = _pad_to(lp['w2'], (h_dim_pad, d_pad))
        b2 = _pad_to(lp['b2'], (1, d_pad))
        gamma = _pad_to(lp['gamma'], (1, d_pad))
        beta = _pad_to(lp['beta'], (1, d_pad))

        h = gin_layer(h, src_col, dst_row, edge_emb,
                      w1, b1, w2, b2, gamma, beta,
                      n_nodes=n_nodes, te=te,
                      apply_relu=(layer != num_layer - 1))
    return h[:n_nodes, :emb_dim]                                   # JK = 'last'


# ---------------------------------- main ----------------------------------- #
if __name__ == "__main__":
    num_layer = 2
    emb_dim = 32
    n_nodes = 16
    n_edges = 24

    key = jax.random.PRNGKey(0)
    kp, kx0, kx1, kei, ke0, ke1 = jax.random.split(key, 6)

    params = init_params(kp, num_layer, emb_dim)

    x = jnp.stack(
        [jax.random.randint(kx0, (n_nodes,), 0, NUM_ATOM_TYPE),
         jax.random.randint(kx1, (n_nodes,), 0, NUM_CHIRALITY_TAG)], axis=1
    ).astype(jnp.int32)                                           # [N, 2]
    edge_index = jax.random.randint(kei, (2, n_edges), 0, n_nodes, jnp.int32)
    edge_attr = jnp.stack(
        [jax.random.randint(ke0, (n_edges,), 0, NUM_BOND_TYPE),
         jax.random.randint(ke1, (n_edges,), 0, NUM_BOND_DIRECTION)], axis=1
    ).astype(jnp.int32)                                           # [E, 2]

    out = gnn_forward(params, x, edge_index, edge_attr, num_layer=num_layer)
    out = jax.block_until_ready(out)
    assert out.shape == (n_nodes, emb_dim)
    assert bool(jnp.all(jnp.isfinite(out)))
    print("KERNEL_OK")
</pallas_src>

<mosaic_0001>
module attributes {stable_mosaic.version = 11 : i64} {
  func.func @gin_layer_kernel(%arg0: i32, %arg1: memref<16x128xf32, #tpu.memory_space<vmem>>, %arg2: memref<128x1xi32, #tpu.memory_space<vmem>>, %arg3: memref<1x128xi32, #tpu.memory_space<vmem>>, %arg4: memref<128x128xf32, #tpu.memory_space<vmem>>, %arg5: memref<128x128xf32, #tpu.memory_space<vmem>>, %arg6: memref<1x128xf32, #tpu.memory_space<vmem>>, %arg7: memref<128x128xf32, #tpu.memory_space<vmem>>, %arg8: memref<1x128xf32, #tpu.memory_space<vmem>>, %arg9: memref<1x128xf32, #tpu.memory_space<vmem>>, %arg10: memref<1x128xf32, #tpu.memory_space<vmem>>, %arg11: memref<16x128xf32, #tpu.memory_space<vmem>>, %arg12: memref<16x128xf32, #tpu.memory_space<vmem>>) attributes {dimension_semantics = [#tpu.dimension_semantics<arbitrary>], iteration_bounds = array<i64: 1>, scalar_prefetch = 0 : i64, scratch_operands = 1 : i64, tpu.core_type = #tpu.core_type<tc>, window_params = [{pipeline_mode = #tpu.pipeline_mode<synchronous>, transform_indices = @transform_0, window_bounds = array<i64: 16, 128>}, {transform_indices = @transform_1, window_bounds = array<i64: 128, 1>}, {transform_indices = @transform_2, window_bounds = array<i64: 1, 128>}, {transform_indices = @transform_3, window_bounds = array<i64: 128, 128>}, {pipeline_mode = #tpu.pipeline_mode<synchronous>, transform_indices = @transform_4, window_bounds = array<i64: 128, 128>}, {pipeline_mode = #tpu.pipeline_mode<synchronous>, transform_indices = @transform_5, window_bounds = array<i64: 1, 128>}, {pipeline_mode = #tpu.pipeline_mode<synchronous>, transform_indices = @transform_6, window_bounds = array<i64: 128, 128>}, {pipeline_mode = #tpu.pipeline_mode<synchronous>, transform_indices = @transform_7, window_bounds = array<i64: 1, 128>}, {pipeline_mode = #tpu.pipeline_mode<synchronous>, transform_indices = @transform_8, window_bounds = array<i64: 1, 128>}, {pipeline_mode = #tpu.pipeline_mode<synchronous>, transform_indices = @transform_9, window_bounds = array<i64: 1, 128>}, {pipeline_mode = #tpu.pipeline_mode<synchronous>, transform_indices = @transform_10, window_bounds = array<i64: 16, 128>}]} {
    %c0_i32 = arith.constant 0 : i32
    %0 = arith.cmpi eq, %arg0, %c0_i32 : i32
    %1 = arith.extui %0 : i1 to i32
    %c0_i32_0 = arith.constant 0 : i32
    %2 = arith.cmpi ne, %1, %c0_i32_0 : i32
    scf.if %2 {
      %cst_15 = arith.constant 0.000000e+00 : f32
      %30 = vector.broadcast %cst_15 : f32 to vector<16x128xf32>
      %c0_16 = arith.constant 0 : index
      %c0_17 = arith.constant 0 : index
      %31 = vector.load %arg12[%c0_16, %c0_17] : memref<16x128xf32, #tpu.memory_space<vmem>>, vector<16x128xf32>
      tpu.vector_store %arg12[%c0_16, %c0_17], %30 {strides = array<i32>} : memref<16x128xf32, #tpu.memory_space<vmem>>, vector<16x128xf32>,
    } else {
    }
    %c0 = arith.constant 0 : index
    %c0_1 = arith.constant 0 : index
    %3 = vector.load %arg1[%c0, %c0_1] : memref<16x128xf32, #tpu.memory_space<vmem>>, vector<16x128xf32>
    %4 = arith.truncf %3 : vector<16x128xf32> to vector<16x128xbf16>
    %5 = tpu.iota {dimensions = array<i32: 1>} : vector<128x16xi32>
    %c0_2 = arith.constant 0 : index
    %c0_3 = arith.constant 0 : index
    %6 = vector.load %arg2[%c0_2, %c0_3] : memref<128x1xi32, #tpu.memory_space<vmem>>, vector<128x1xi32>
    %7 = vector.broadcast %6 : vector<128x1xi32> to vector<128x16xi32>
    %8 = arith.cmpi eq, %7, %5 : vector<128x16xi32>
    %9 = arith.extui %8 : vector<128x16xi1> to vector<128x16xi32>
    %10 = arith.sitofp %9 : vector<128x16xi32> to vector<128x16xf32>
    %11 = arith.truncf %10 : vector<128x16xf32> to vector<128x16xbf16>
    %cst = arith.constant dense<0.000000e+00> : vector<128x128xf32>
    %12 = tpu.matmul %11, %4, %cst {dimension_numbers = #tpu.dot_dimension_numbers<[1], [0], [0], [1], [0, 0, 1, 1], [], []>} : vector<128x16xbf16>, vector<16x128xbf16>, vector<128x128xf32> -> vector<128x128xf32>
    %c0_4 = arith.constant 0 : index
    %c0_5 = arith.constant 0 : index
    %13 = vector.load %arg4[%c0_4, %c0_5] : memref<128x128xf32, #tpu.memory_space<vmem>>, vector<128x128xf32>
    %14 = arith.addf %12, %13 : vector<128x128xf32>
    %15 = arith.truncf %14 : vector<128x128xf32> to vector<128x128xbf16>
    %16 = tpu.iota {dimensions = array<i32: 0>} : vector<16x128xi32>
    %c0_6 = arith.constant 0 : index
    %c0_7 = arith.constant 0 : index
    %17 = vector.load %arg3[%c0_6, %c0_7] : memref<1x128xi32, #tpu.memory_space<vmem>>, vector<1x128xi32>
    %18 = vector.broadcast %17 : vector<1x128xi32> to vector<16x128xi32>
    %19 = arith.cmpi eq, %18, %16 : vector<16x128xi32>
    %20 = arith.extui %19 : vector<16x128xi1> to vector<16x128xi32>
    %21 = arith.sitofp %20 : vector<16x128xi32> to vector<16x128xf32>
    %22 = arith.truncf %21 : vector<16x128xf32> to vector<16x128xbf16>
    %c0_8 = arith.constant 0 : index
    %c0_9 = arith.constant 0 : index
    %23 = vector.load %arg12[%c0_8, %c0_9] : memref<16x128xf32, #tpu.memory_space<vmem>>, vector<16x128xf32>
    %cst_10 = arith.constant dense<0.000000e+00> : vector<16x128xf32>
    %24 = tpu.matmul %22, %15, %cst_10 {dimension_numbers = #tpu.dot_dimension_numbers<[1], [0], [0], [1], [0, 0, 1, 1], [], []>} : vector<16x128xbf16>, vector<128x128xbf16>, vector<16x128xf32> -> vector<16x128xf32>
    %25 = arith.addf %23, %24 : vector<16x128xf32>
    %c0_11 = arith.constant 0 : index
    %c0_12 = arith.constant 0 : index
    %26 = vector.load %arg12[%c0_11, %c0_12] : memref<16x128xf32, #tpu.memory_space<vmem>>, vector<16x128xf32>
    tpu.vector_store %arg12[%c0_11, %c0_12], %25 {strides = array<i32>} : memref<16x128xf32, #tpu.memory_space<vmem>>, vector<16x128xf32>,
    %c0_i32_13 = arith.constant 0 : i32
    %27 = arith.cmpi eq, %arg0, %c0_i32_13 : i32
    %28 = arith.extui %27 : i1 to i32
    %c0_i32_14 = arith.constant 0 : i32
    %29 = arith.cmpi ne, %28, %c0_i32_14 : i32
    scf.if %29 {
      %c0_15 = arith.constant 0 : index
      %c0_16 = arith.constant 0 : index
      %30 = vector.load %arg12[%c0_15, %c0_16] : memref<16x128xf32, #tpu.memory_space<vmem>>, vector<16x128xf32>
      %31 = arith.truncf %30 : vector<16x128xf32> to vector<16x128xbf16>
      %c0_17 = arith.constant 0 : index
      %c0_18 = arith.constant 0 : index
      %32 = vector.load %arg5[%c0_17, %c0_18] : memref<128x128xf32, #tpu.memory_space<vmem>>, vector<128x128xf32>
      %33 = arith.truncf %32 : vector<128x128xf32> to vector<128x128xbf16>
      %cst_19 = arith.constant dense<0.000000e+00> : vector<16x128xf32>
      %34 = tpu.matmul %31, %33, %cst_19 {dimension_numbers = #tpu.dot_dimension_numbers<[1], [0], [0], [1], [0, 0, 1, 1], [], []>} : vector<16x128xbf16>, vector<128x128xbf16>, vector<16x128xf32> -> vector<16x128xf32>
      %c0_20 = arith.constant 0 : index
      %c0_21 = arith.constant 0 : index
      %35 = vector.load %arg6[%c0_20, %c0_21] : memref<1x128xf32, #tpu.memory_space<vmem>>, vector<1x128xf32>
      %36 = vector.broadcast %35 : vector<1x128xf32> to vector<16x128xf32>
      %37 = arith.addf %34, %36 : vector<16x128xf32>
      %cst_22 = arith.constant 0.000000e+00 : f32
      %38 = vector.broadcast %cst_22 : f32 to vector<16x128xf32>
      %39 = arith.maximumf %37, %38 : vector<16x128xf32>
      %40 = arith.truncf %39 : vector<16x128xf32> to vector<16x128xbf16>
      %c0_23 = arith.constant 0 : index
      %c0_24 = arith.constant 0 : index
      %41 = vector.load %arg7[%c0_23, %c0_24] : memref<128x128xf32, #tpu.memory_space<vmem>>, vector<128x128xf32>
      %42 = arith.truncf %41 : vector<128x128xf32> to vector<128x128xbf16>
      %cst_25 = arith.constant dense<0.000000e+00> : vector<16x128xf32>
      %43 = tpu.matmul %40, %42, %cst_25 {dimension_numbers = #tpu.dot_dimension_numbers<[1], [0], [0], [1], [0, 0, 1, 1], [], []>} : vector<16x128xbf16>, vector<128x128xbf16>, vector<16x128xf32> -> vector<16x128xf32>
      %c0_26 = arith.constant 0 : index
      %c0_27 = arith.constant 0 : index
      %44 = vector.load %arg8[%c0_26, %c0_27] : memref<1x128xf32, #tpu.memory_space<vmem>>, vector<1x128xf32>
      %45 = vector.broadcast %44 : vector<1x128xf32> to vector<16x128xf32>
      %46 = arith.addf %43, %45 : vector<16x128xf32>
      %47 = tpu.iota {dimensions = array<i32: 0>} : vector<16x1xi32>
      %c16_i32 = arith.constant 16 : i32
      %48 = vector.broadcast %c16_i32 : i32 to vector<16x1xi32>
      %49 = arith.cmpi slt, %47, %48 : vector<16x1xi32>
      %50 = arith.extui %49 : vector<16x1xi1> to vector<16x1xi32>
      %51 = arith.sitofp %50 : vector<16x1xi32> to vector<16x1xf32>
      %52 = vector.broadcast %51 : vector<16x1xf32> to vector<16x128xf32>
      %53 = arith.mulf %46, %52 : vector<16x128xf32>
      %cst_28 = arith.constant dense<0.000000e+00> : vector<128xf32>
      %54 = vector.multi_reduction <add>, %53, %cst_28 [0] : vector<16x128xf32> to vector<128xf32>
      %55 = vector.shape_cast %54 : vector<128xf32> to vector<1x128xf32>
      %cst_29 = arith.constant 6.250000e-02 : f32
      %56 = vector.broadcast %cst_29 : f32 to vector<1x128xf32>
      %57 = arith.mulf %55, %56 : vector<1x128xf32>
      %58 = vector.broadcast %57 : vector<1x128xf32> to vector<16x128xf32>
      %59 = arith.subf %46, %58 : vector<16x128xf32>
      %60 = vector.broadcast %51 : vector<16x1xf32> to vector<16x128xf32>
      %61 = arith.mulf %59, %60 : vector<16x128xf32>
      %62 = arith.mulf %61, %61 : vector<16x128xf32>
      %cst_30 = arith.constant dense<0.000000e+00> : vector<128xf32>
      %63 = vector.multi_reduction <add>, %62, %cst_30 [0] : vector<16x128xf32> to vector<128xf32>
      %64 = vector.shape_cast %63 : vector<128xf32> to vector<1x128xf32>
      %cst_31 = arith.constant 6.250000e-02 : f32
      %65 = vector.broadcast %cst_31 : f32 to vector<1x128xf32>
      %66 = arith.mulf %64, %65 : vector<1x128xf32>
      %67 = vector.broadcast %57 : vector<1x128xf32> to vector<16x128xf32>
      %68 = arith.subf %46, %67 : vector<16x128xf32>
      %cst_32 = arith.constant 9.99999974E-6 : f32
      %69 = vector.broadcast %cst_32 : f32 to vector<1x128xf32>
      %70 = arith.addf %66, %69 : vector<1x128xf32>
      %71 = math.rsqrt %70 : vector<1x128xf32>
      %72 = vector.broadcast %71 : vector<1x128xf32> to vector<16x128xf32>
      %73 = arith.mulf %68, %72 : vector<16x128xf32>
      %c0_33 = arith.constant 0 : index
      %c0_34 = arith.constant 0 : index
      %74 = vector.load %arg9[%c0_33, %c0_34] : memref<1x128xf32, #tpu.memory_space<vmem>>, vector<1x128xf32>
      %75 = vector.broadcast %74 : vector<1x128xf32> to vector<16x128xf32>
      %76 = arith.mulf %73, %75 : vector<16x128xf32>
      %c0_35 = arith.constant 0 : index
      %c0_36 = arith.constant 0 : index
      %77 = vector.load %arg10[%c0_35, %c0_36] : memref<1x128xf32, #tpu.memory_space<vmem>>, vector<1x128xf32>
      %78 = vector.broadcast %77 : vector<1x128xf32> to vector<16x128xf32>
      %79 = arith.addf %76, %78 : vector<16x128xf32>
      %cst_37 = arith.constant 0.000000e+00 : f32
      %80 = vector.broadcast %cst_37 : f32 to vector<16x128xf32>
      %81 = arith.maximumf %79, %80 : vector<16x128xf32>
      %82 = vector.broadcast %51 : vector<16x1xf32> to vector<16x128xf32>
      %83 = arith.mulf %81, %82 : vector<16x128xf32>
      %c0_38 = arith.constant 0 : index
      %c0_39 = arith.constant 0 : index
      %84 = vector.load %arg11[%c0_38, %c0_39] : memref<16x128xf32, #tpu.memory_space<vmem>>, vector<16x128xf32>
      tpu.vector_store %arg11[%c0_38, %c0_39], %83 {strides = array<i32>} : memref<16x128xf32, #tpu.memory_space<vmem>>, vector<16x128xf32>,
    } else {
    }
    return
  }
  func.func @transform_0(%arg0: i32) -> (i32, i32) {
    %c0_i32 = arith.constant 0 : i32
    %c0_i32_0 = arith.constant 0 : i32
    %c0_i32_1 = arith.constant 0 : i32
    return %c0_i32, %c0_i32_0 : i32, i32
  }
  func.func @transform_1(%arg0: i32) -> (i32, i32) {
    %c0_i32 = arith.constant 0 : i32
    %c0_i32_0 = arith.constant 0 : i32
    return %arg0, %c0_i32 : i32, i32
  }
  func.func @transform_2(%arg0: i32) -> (i32, i32) {
    %c0_i32 = arith.constant 0 : i32
    %c0_i32_0 = arith.constant 0 : i32
    return %c0_i32, %arg0 : i32, i32
  }
  func.func @transform_3(%arg0: i32) -> (i32, i32) {
    %c0_i32 = arith.constant 0 : i32
    %c0_i32_0 = arith.constant 0 : i32
    return %arg0, %c0_i32 : i32, i32
  }
  func.func @transform_4(%arg0: i32) -> (i32, i32) {
    %c0_i32 = arith.constant 0 : i32
    %c0_i32_0 = arith.constant 0 : i32
    %c0_i32_1 = arith.constant 0 : i32
    return %c0_i32, %c0_i32_0 : i32, i32
  }
  func.func @transform_5(%arg0: i32) -> (i32, i32) {
    %c0_i32 = arith.constant 0 : i32
    %c0_i32_0 = arith.constant 0 : i32
    %c0_i32_1 = arith.constant 0 : i32
    return %c0_i32, %c0_i32_0 : i32, i32
  }
  func.func @transform_6(%arg0: i32) -> (i32, i32) {
    %c0_i32 = arith.constant 0 : i32
    %c0_i32_0 = arith.constant 0 : i32
    %c0_i32_1 = arith.constant 0 : i32
    return %c0_i32, %c0_i32_0 : i32, i32
  }
  func.func @transform_7(%arg0: i32) -> (i32, i32) {
    %c0_i32 = arith.constant 0 : i32
    %c0_i32_0 = arith.constant 0 : i32
    %c0_i32_1 = arith.constant 0 : i32
    return %c0_i32, %c0_i32_0 : i32, i32
  }
  func.func @transform_8(%arg0: i32) -> (i32, i32) {
    %c0_i32 = arith.constant 0 : i32
    %c0_i32_0 = arith.constant 0 : i32
    %c0_i32_1 = arith.constant 0 : i32
    return %c0_i32, %c0_i32_0 : i32, i32
  }
  func.func @transform_9(%arg0: i32) -> (i32, i32) {
    %c0_i32 = arith.constant 0 : i32
    %c0_i32_0 = arith.constant 0 : i32
    %c0_i32_1 = arith.constant 0 : i32
    return %c0_i32, %c0_i32_0 : i32, i32
  }
  func.func @transform_10(%arg0: i32) -> (i32, i32) {
    %c0_i32 = arith.constant 0 : i32
    %c0_i32_0 = arith.constant 0 : i32
    %c0_i32_1 = arith.constant 0 : i32
    return %c0_i32, %c0_i32_0 : i32, i32
  }
}

module attributes {stable_mosaic.version = 11 : i64} {
  func.func @gin_layer_kernel(%arg0: i32, %arg1: memref<16x128xf32, #tpu.memory_space<vmem>>, %arg2: memref<128x1xi32, #tpu.memory_space<vmem>>, %arg3: memref<1x128xi32, #tpu.memory_space<vmem>>, %arg4: memref<128x128xf32, #tpu.memory_space<vmem>>, %arg5: memref<128x128xf32, #tpu.memory_space<vmem>>, %arg6: memref<1x128xf32, #tpu.memory_space<vmem>>, %arg7: memref<128x128xf32, #tpu.memory_space<vmem>>, %arg8: memref<1x128xf32, #tpu.memory_space<vmem>>, %arg9: memref<1x128xf32, #tpu.memory_space<vmem>>, %arg10: memref<1x128xf32, #tpu.memory_space<vmem>>, %arg11: memref<16x128xf32, #tpu.memory_space<vmem>>, %arg12: memref<16x128xf32, #tpu.memory_space<vmem>>) attributes {dimension_semantics = [#tpu.dimension_semantics<arbitrary>], iteration_bounds = array<i64: 1>, scalar_prefetch = 0 : i64, scratch_operands = 1 : i64, tpu.core_type = #tpu.core_type<tc>, window_params = [{pipeline_mode = #tpu.pipeline_mode<synchronous>, transform_indices = @transform_0, window_bounds = array<i64: 16, 128>}, {transform_indices = @transform_1, window_bounds = array<i64: 128, 1>}, {transform_indices = @transform_2, window_bounds = array<i64: 1, 128>}, {transform_indices = @transform_3, window_bounds = array<i64: 128, 128>}, {pipeline_mode = #tpu.pipeline_mode<synchronous>, transform_indices = @transform_4, window_bounds = array<i64: 128, 128>}, {pipeline_mode = #tpu.pipeline_mode<synchronous>, transform_indices = @transform_5, window_bounds = array<i64: 1, 128>}, {pipeline_mode = #tpu.pipeline_mode<synchronous>, transform_indices = @transform_6, window_bounds = array<i64: 128, 128>}, {pipeline_mode = #tpu.pipeline_mode<synchronous>, transform_indices = @transform_7, window_bounds = array<i64: 1, 128>}, {pipeline_mode = #tpu.pipeline_mode<synchronous>, transform_indices = @transform_8, window_bounds = array<i64: 1, 128>}, {pipeline_mode = #tpu.pipeline_mode<synchronous>, transform_indices = @transform_9, window_bounds = array<i64: 1, 128>}, {pipeline_mode = #tpu.pipeline_mode<synchronous>, transform_indices = @transform_10, window_bounds = array<i64: 16, 128>}]} {
    %c0_i32 = arith.constant 0 : i32
    %0 = arith.cmpi eq, %arg0, %c0_i32 : i32
    %1 = arith.extui %0 : i1 to i32
    %c0_i32_0 = arith.constant 0 : i32
    %2 = arith.cmpi ne, %1, %c0_i32_0 : i32
    scf.if %2 {
      %cst_15 = arith.constant 0.000000e+00 : f32
      %30 = vector.broadcast %cst_15 : f32 to vector<16x128xf32>
      %c0_16 = arith.constant 0 : index
      %c0_17 = arith.constant 0 : index
      %31 = vector.load %arg12[%c0_16, %c0_17] : memref<16x128xf32, #tpu.memory_space<vmem>>, vector<16x128xf32>
      tpu.vector_store %arg12[%c0_16, %c0_17], %30 {strides = array<i32>} : memref<16x128xf32, #tpu.memory_space<vmem>>, vector<16x128xf32>,
    } else {
    }
    %c0 = arith.constant 0 : index
    %c0_1 = arith.constant 0 : index
    %3 = vector.load %arg1[%c0, %c0_1] : memref<16x128xf32, #tpu.memory_space<vmem>>, vector<16x128xf32>
    %4 = arith.truncf %3 : vector<16x128xf32> to vector<16x128xbf16>
    %5 = tpu.iota {dimensions = array<i32: 1>} : vector<128x16xi32>
    %c0_2 = arith.constant 0 : index
    %c0_3 = arith.constant 0 : index
    %6 = vector.load %arg2[%c0_2, %c0_3] : memref<128x1xi32, #tpu.memory_space<vmem>>, vector<128x1xi32>
    %7 = vector.broadcast %6 : vector<128x1xi32> to vector<128x16xi32>
    %8 = arith.cmpi eq, %7, %5 : vector<128x16xi32>
    %9 = arith.extui %8 : vector<128x16xi1> to vector<128x16xi32>
    %10 = arith.sitofp %9 : vector<128x16xi32> to vector<128x16xf32>
    %11 = arith.truncf %10 : vector<128x16xf32> to vector<128x16xbf16>
    %cst = arith.constant dense<0.000000e+00> : vector<128x128xf32>
    %12 = tpu.matmul %11, %4, %cst {dimension_numbers = #tpu.dot_dimension_numbers<[1], [0], [0], [1], [0, 0, 1, 1], [], []>} : vector<128x16xbf16>, vector<16x128xbf16>, vector<128x128xf32> -> vector<128x128xf32>
    %c0_4 = arith.constant 0 : index
    %c0_5 = arith.constant 0 : index
    %13 = vector.load %arg4[%c0_4, %c0_5] : memref<128x128xf32, #tpu.memory_space<vmem>>, vector<128x128xf32>
    %14 = arith.addf %12, %13 : vector<128x128xf32>
    %15 = arith.truncf %14 : vector<128x128xf32> to vector<128x128xbf16>
    %16 = tpu.iota {dimensions = array<i32: 0>} : vector<16x128xi32>
    %c0_6 = arith.constant 0 : index
    %c0_7 = arith.constant 0 : index
    %17 = vector.load %arg3[%c0_6, %c0_7] : memref<1x128xi32, #tpu.memory_space<vmem>>, vector<1x128xi32>
    %18 = vector.broadcast %17 : vector<1x128xi32> to vector<16x128xi32>
    %19 = arith.cmpi eq, %18, %16 : vector<16x128xi32>
    %20 = arith.extui %19 : vector<16x128xi1> to vector<16x128xi32>
    %21 = arith.sitofp %20 : vector<16x128xi32> to vector<16x128xf32>
    %22 = arith.truncf %21 : vector<16x128xf32> to vector<16x128xbf16>
    %c0_8 = arith.constant 0 : index
    %c0_9 = arith.constant 0 : index
    %23 = vector.load %arg12[%c0_8, %c0_9] : memref<16x128xf32, #tpu.memory_space<vmem>>, vector<16x128xf32>
    %cst_10 = arith.constant dense<0.000000e+00> : vector<16x128xf32>
    %24 = tpu.matmul %22, %15, %cst_10 {dimension_numbers = #tpu.dot_dimension_numbers<[1], [0], [0], [1], [0, 0, 1, 1], [], []>} : vector<16x128xbf16>, vector<128x128xbf16>, vector<16x128xf32> -> vector<16x128xf32>
    %25 = arith.addf %23, %24 : vector<16x128xf32>
    %c0_11 = arith.constant 0 : index
    %c0_12 = arith.constant 0 : index
    %26 = vector.load %arg12[%c0_11, %c0_12] : memref<16x128xf32, #tpu.memory_space<vmem>>, vector<16x128xf32>
    tpu.vector_store %arg12[%c0_11, %c0_12], %25 {strides = array<i32>} : memref<16x128xf32, #tpu.memory_space<vmem>>, vector<16x128xf32>,
    %c0_i32_13 = arith.constant 0 : i32
    %27 = arith.cmpi eq, %arg0, %c0_i32_13 : i32
    %28 = arith.extui %27 : i1 to i32
    %c0_i32_14 = arith.constant 0 : i32
    %29 = arith.cmpi ne, %28, %c0_i32_14 : i32
    scf.if %29 {
      %c0_15 = arith.constant 0 : index
      %c0_16 = arith.constant 0 : index
      %30 = vector.load %arg12[%c0_15, %c0_16] : memref<16x128xf32, #tpu.memory_space<vmem>>, vector<16x128xf32>
      %31 = arith.truncf %30 : vector<16x128xf32> to vector<16x128xbf16>
      %c0_17 = arith.constant 0 : index
      %c0_18 = arith.constant 0 : index
      %32 = vector.load %arg5[%c0_17, %c0_18] : memref<128x128xf32, #tpu.memory_space<vmem>>, vector<128x128xf32>
      %33 = arith.truncf %32 : vector<128x128xf32> to vector<128x128xbf16>
      %cst_19 = arith.constant dense<0.000000e+00> : vector<16x128xf32>
      %34 = tpu.matmul %31, %33, %cst_19 {dimension_numbers = #tpu.dot_dimension_numbers<[1], [0], [0], [1], [0, 0, 1, 1], [], []>} : vector<16x128xbf16>, vector<128x128xbf16>, vector<16x128xf32> -> vector<16x128xf32>
      %c0_20 = arith.constant 0 : index
      %c0_21 = arith.constant 0 : index
      %35 = vector.load %arg6[%c0_20, %c0_21] : memref<1x128xf32, #tpu.memory_space<vmem>>, vector<1x128xf32>
      %36 = vector.broadcast %35 : vector<1x128xf32> to vector<16x128xf32>
      %37 = arith.addf %34, %36 : vector<16x128xf32>
      %cst_22 = arith.constant 0.000000e+00 : f32
      %38 = vector.broadcast %cst_22 : f32 to vector<16x128xf32>
      %39 = arith.maximumf %37, %38 : vector<16x128xf32>
      %40 = arith.truncf %39 : vector<16x128xf32> to vector<16x128xbf16>
      %c0_23 = arith.constant 0 : index
      %c0_24 = arith.constant 0 : index
      %41 = vector.load %arg7[%c0_23, %c0_24] : memref<128x128xf32, #tpu.memory_space<vmem>>, vector<128x128xf32>
      %42 = arith.truncf %41 : vector<128x128xf32> to vector<128x128xbf16>
      %cst_25 = arith.constant dense<0.000000e+00> : vector<16x128xf32>
      %43 = tpu.matmul %40, %42, %cst_25 {dimension_numbers = #tpu.dot_dimension_numbers<[1], [0], [0], [1], [0, 0, 1, 1], [], []>} : vector<16x128xbf16>, vector<128x128xbf16>, vector<16x128xf32> -> vector<16x128xf32>
      %c0_26 = arith.constant 0 : index
      %c0_27 = arith.constant 0 : index
      %44 = vector.load %arg8[%c0_26, %c0_27] : memref<1x128xf32, #tpu.memory_space<vmem>>, vector<1x128xf32>
      %45 = vector.broadcast %44 : vector<1x128xf32> to vector<16x128xf32>
      %46 = arith.addf %43, %45 : vector<16x128xf32>
      %47 = tpu.iota {dimensions = array<i32: 0>} : vector<16x1xi32>
      %c16_i32 = arith.constant 16 : i32
      %48 = vector.broadcast %c16_i32 : i32 to vector<16x1xi32>
      %49 = arith.cmpi slt, %47, %48 : vector<16x1xi32>
      %50 = arith.extui %49 : vector<16x1xi1> to vector<16x1xi32>
      %51 = arith.sitofp %50 : vector<16x1xi32> to vector<16x1xf32>
      %52 = vector.broadcast %51 : vector<16x1xf32> to vector<16x128xf32>
      %53 = arith.mulf %46, %52 : vector<16x128xf32>
      %cst_28 = arith.constant dense<0.000000e+00> : vector<128xf32>
      %54 = vector.multi_reduction <add>, %53, %cst_28 [0] : vector<16x128xf32> to vector<128xf32>
      %55 = vector.shape_cast %54 : vector<128xf32> to vector<1x128xf32>
      %cst_29 = arith.constant 6.250000e-02 : f32
      %56 = vector.broadcast %cst_29 : f32 to vector<1x128xf32>
      %57 = arith.mulf %55, %56 : vector<1x128xf32>
      %58 = vector.broadcast %57 : vector<1x128xf32> to vector<16x128xf32>
      %59 = arith.subf %46, %58 : vector<16x128xf32>
      %60 = vector.broadcast %51 : vector<16x1xf32> to vector<16x128xf32>
      %61 = arith.mulf %59, %60 : vector<16x128xf32>
      %62 = arith.mulf %61, %61 : vector<16x128xf32>
      %cst_30 = arith.constant dense<0.000000e+00> : vector<128xf32>
      %63 = vector.multi_reduction <add>, %62, %cst_30 [0] : vector<16x128xf32> to vector<128xf32>
      %64 = vector.shape_cast %63 : vector<128xf32> to vector<1x128xf32>
      %cst_31 = arith.constant 6.250000e-02 : f32
      %65 = vector.broadcast %cst_31 : f32 to vector<1x128xf32>
      %66 = arith.mulf %64, %65 : vector<1x128xf32>
      %67 = vector.broadcast %57 : vector<1x128xf32> to vector<16x128xf32>
      %68 = arith.subf %46, %67 : vector<16x128xf32>
      %cst_32 = arith.constant 9.99999974E-6 : f32
      %69 = vector.broadcast %cst_32 : f32 to vector<1x128xf32>
      %70 = arith.addf %66, %69 : vector<1x128xf32>
      %71 = math.rsqrt %70 : vector<1x128xf32>
      %72 = vector.broadcast %71 : vector<1x128xf32> to vector<16x128xf32>
      %73 = arith.mulf %68, %72 : vector<16x128xf32>
      %c0_33 = arith.constant 0 : index
      %c0_34 = arith.constant 0 : index
      %74 = vector.load %arg9[%c0_33, %c0_34] : memref<1x128xf32, #tpu.memory_space<vmem>>, vector<1x128xf32>
      %75 = vector.broadcast %74 : vector<1x128xf32> to vector<16x128xf32>
      %76 = arith.mulf %73, %75 : vector<16x128xf32>
      %c0_35 = arith.constant 0 : index
      %c0_36 = arith.constant 0 : index
      %77 = vector.load %arg10[%c0_35, %c0_36] : memref<1x128xf32, #tpu.memory_space<vmem>>, vector<1x128xf32>
      %78 = vector.broadcast %77 : vector<1x128xf32> to vector<16x128xf32>
      %79 = arith.addf %76, %78 : vector<16x128xf32>
      %80 = vector.broadcast %51 : vector<16x1xf32> to vector<16x128xf32>
      %81 = arith.mulf %79, %80 : vector<16x128xf32>
      %c0_37 = arith.constant 0 : index
      %c0_38 = arith.constant 0 : index
      %82 = vector.load %arg11[%c0_37, %c0_38] : memref<16x128xf32, #tpu.memory_space<vmem>>, vector<16x128xf32>
      tpu.vector_store %arg11[%c0_37, %c0_38], %81 {strides = array<i32>} : memref<16x128xf32, #tpu.memory_space<vmem>>, vector<16x128xf32>,
    } else {
    }
    return
  }
  func.func @transform_0(%arg0: i32) -> (i32, i32) {
    %c0_i32 = arith.constant 0 : i32
    %c0_i32_0 = arith.constant 0 : i32
    %c0_i32_1 = arith.constant 0 : i32
    return %c0_i32, %c0_i32_0 : i32, i32
  }
  func.func @transform_1(%arg0: i32) -> (i32, i32) {
    %c0_i32 = arith.constant 0 : i32
    %c0_i32_0 = arith.constant 0 : i32
    return %arg0, %c0_i32 : i32, i32
  }
  func.func @transform_2(%arg0: i32) -> (i32, i32) {
    %c0_i32 = arith.constant 0 : i32
    %c0_i32_0 = arith.constant 0 : i32
    return %c0_i32, %arg0 : i32, i32
  }
  func.func @transform_3(%arg0: i32) -> (i32, i32) {
    %c0_i32 = arith.constant 0 : i32
    %c0_i32_0 = arith.constant 0 : i32
    return %arg0, %c0_i32 : i32, i32
  }
  func.func @transform_4(%arg0: i32) -> (i32, i32) {
    %c0_i32 = arith.constant 0 : i32
    %c0_i32_0 = arith.constant 0 : i32
    %c0_i32_1 = arith.constant 0 : i32
    return %c0_i32, %c0_i32_0 : i32, i32
  }
  func.func @transform_5(%arg0: i32) -> (i32, i32) {
    %c0_i32 = arith.constant 0 : i32
    %c0_i32_0 = arith.constant 0 : i32
    %c0_i32_1 = arith.constant 0 : i32
    return %c0_i32, %c0_i32_0 : i32, i32
  }
  func.func @transform_6(%arg0: i32) -> (i32, i32) {
    %c0_i32 = arith.constant 0 : i32
    %c0_i32_0 = arith.constant 0 : i32
    %c0_i32_1 = arith.constant 0 : i32
    return %c0_i32, %c0_i32_0 : i32, i32
  }
  func.func @transform_7(%arg0: i32) -> (i32, i32) {
    %c0_i32 = arith.constant 0 : i32
    %c0_i32_0 = arith.constant 0 : i32
    %c0_i32_1 = arith.constant 0 : i32
    return %c0_i32, %c0_i32_0 : i32, i32
  }
  func.func @transform_8(%arg0: i32) -> (i32, i32) {
    %c0_i32 = arith.constant 0 : i32
    %c0_i32_0 = arith.constant 0 : i32
    %c0_i32_1 = arith.constant 0 : i32
    return %c0_i32, %c0_i32_0 : i32, i32
  }
  func.func @transform_9(%arg0: i32) -> (i32, i32) {
    %c0_i32 = arith.constant 0 : i32
    %c0_i32_0 = arith.constant 0 : i32
    %c0_i32_1 = arith.constant 0 : i32
    return %c0_i32, %c0_i32_0 : i32, i32
  }
  func.func @transform_10(%arg0: i32) -> (i32, i32) {
    %c0_i32 = arith.constant 0 : i32
    %c0_i32_0 = arith.constant 0 : i32
    %c0_i32_1 = arith.constant 0 : i32
    return %c0_i32, %c0_i32_0 : i32, i32
  }
}

</mosaic_0001>

<bundles_post_ra>
// kernel: gnn_forward.2
= control target key start
LH: loop header
LB: loop body
LE: loop exit
PB: predicated region body
PF: predicated region fallthrough
CT: control target
= control target key end

     0   :  { %v745_v0 = vmov 0   ;;  %v746_v5 = vmov 0.0   ;;  %v45_v21 = vlaneseq  ;;  %vm183_vm4 = vcmask 130048   ;;  %s1106_s1 = inlined_call_operand.vmem [shape: s32[128,1], index: 1, kind: input, shape index: {}]   ;;  %s1107_s0 = inlined_call_operand.vmem [shape: f32[16,128], index: 0, kind: input, shape index: {}]   ;;  %s1108_s4 = inlined_call_operand.vmem [shape: f32[128,128], index: 4, kind: input, shape index: {}]   ;;  %s1109_s3 = inlined_call_operand.vmem [shape: f32[128,128], index: 3, kind: input, shape index: {}]   ;;  %s1110_s2 = inlined_call_operand.vmem [shape: s32[1,128], index: 2, kind: input, shape index: {}]   ;;  %s1111_s6 = inlined_call_operand.vmem [shape: f32[128,128], index: 6, kind: input, shape index: {}]   ;;  %s1112_s5 = inlined_call_operand.vmem [shape: f32[1,128], index: 5, kind: input, shape index: {}]   ;;  %s1113_s7 = inlined_call_operand.vmem [shape: f32[1,128], index: 7, kind: input, shape index: {}]   ;;  %s1114_s8 = inlined_call_operand.vmem [shape: f32[1,128], index: 8, kind: input, shape index: {}]   ;;  %s1115_s9 = inlined_call_operand.vmem [shape: f32[1,128], index: 9, kind: input, shape index: {}]   ;;  %s1116_s10 = inlined_call_operand.vmem [shape: f32[16,128], index: 10, kind: output, shape index: {}]  }
   0x1   :  { %742 = vset.pattern.permute.xlu1 %v745_v0  ;;  %741 = vset.pattern.permute.xlu0 %v745_v0  ;;  %v49_v1 = vld [vmem:[%s1106_s1 + $0x10] sm:$0xff]  ;;  %v47_v2 = vld [vmem:[%s1106_s1] sm:$0xff]  ;;  %v50_v3 = vld [vmem:[%s1106_s1 + $0x18] sm:$0xff] }
   0x2   :  { %70 = vperm.xlu1 %742, %v49_v1   ;;  %64 = vperm.xlu0 %741, %v47_v2   ;;  %v48_v4 = vld [vmem:[%s1106_s1 + $0x8] sm:$0xff]  ;;  %v42_v6 = vld [vmem:[%s1107_s0] sm:$0xff]  ;;  %v54_v11 = vld [vmem:[%s1106_s1 + $0x38] sm:$0xff]  ;;  %v861_v22 = vand.u32 127, %v45_v21 }
   0x3   :  { %677 = vmatprep.subr.bf16.mxu1 %v746_v5  ;;  %v43_v7 = vld [vmem:[%s1107_s0 + $0x8] sm:$0xff]  ;;  %v51_v9 = vld [vmem:[%s1106_s1 + $0x20] sm:$0xff]  ;;  %v53_v12 = vld [vmem:[%s1106_s1 + $0x30] sm:$0xff] }
   0x4   :  { %v52_v8 = vld [vmem:[%s1106_s1 + $0x28] sm:$0xff]  ;;  %v44_v10 = vpack.c.bf16 %v43_v7, %v42_v6  ;;  %v55_v14 = vld [vmem:[%s1106_s1 + $0x40] sm:$0xff]  ;;  %v58_v15 = vld [vmem:[%s1106_s1 + $0x58] sm:$0xff] }
   0x5   :  { %v56_v13 = vld [vmem:[%s1106_s1 + $0x48] sm:$0xff]  ;;  %v57_v16 = vld [vmem:[%s1106_s1 + $0x50] sm:$0xff]  ;;  %v59_v18 = vld [vmem:[%s1106_s1 + $0x60] sm:$0xff] }
   0x6   :  { %73 = vperm.xlu1 %742, %v50_v3   ;;  %67 = vperm.xlu0 %741, %v48_v4   ;;  %v60_v17 = vld [vmem:[%s1106_s1 + $0x68] sm:$0xff]  ;;  %v62_v19 = vld [vmem:[%s1106_s1 + $0x78] sm:$0xff]  ;;  %v61_v20 = vld [vmem:[%s1106_s1 + $0x70] sm:$0xff] }
   0x7   :  { %659 = vmatprep.subr.bf16.mxu0 %v44_v10  ;;  %v395_v63 = vld [vmem:[%s1108_s4 + $0x70] sm:$0xff]  ;;  %v396_v0 = vld [vmem:[%s1108_s4 + $0x78] sm:$0xff]  ;;  %v393_v1 = vld [vmem:[%s1108_s4 + $0x60] sm:$0xff] }
   0x8   :  { %660 = vmatpush3.bf16.msra.mxu0 %v44_v10  ;;  %v404_v2 = vpack.c.bf16 %v396_v0, %v395_v63  ;;  %v394_v3 = vld [vmem:[%s1108_s4 + $0x68] sm:$0xff]  ;;  %v391_v6 = vld [vmem:[%s1108_s4 + $0x50] sm:$0xff]  ;;  %v392_v7 = vld [vmem:[%s1108_s4 + $0x58] sm:$0xff] }
   0x9   :  { %697 = vmatprep.subr.bf16.mxu0 %v746_v5  ;;  %v403_v4 = vpack.c.bf16 %v394_v3, %v393_v1  ;;  %v390_v10 = vld [vmem:[%s1108_s4 + $0x48] sm:$0xff]  ;;  %v171_v63 = vld [vmem:[%s1109_s3 + $0x20] sm:$0xff] }
   0xa   :  { %79 = vperm.xlu1 %742, %v52_v8   ;;  %76 = vperm.xlu0 %741, %v51_v9   ;;  %v402_v8 = vpack.c.bf16 %v392_v7, %v391_v6  ;;  %v389_v9 = vld [vmem:[%s1108_s4 + $0x40] sm:$0xff]  ;;  %v314_v6 = vshrl.u32 %v45_v21, 7 }
   0xb   :  { %v614_v21 = vld [vmem:[%s1110_s2] ss:$0 sm:$0xff] }
   0xe   :  { %85 = vperm.xlu1 %742, %v54_v11   ;;  %82 = vperm.xlu0 %741, %v53_v12   ;;  %v401_v11 = vpack.c.bf16 %v390_v10, %v389_v9  ;;  %v387_v12 = vld [vmem:[%s1108_s4 + $0x30] sm:$0xff]  ;;  %v168_v9 = vld [vmem:[%s1109_s3 + $0x8] sm:$0xff] }
  0x12   :  { %91 = vperm.xlu1 %742, %v56_v13   ;;  %88 = vperm.xlu0 %741, %v55_v14   ;;  %v388_v13 = vld [vmem:[%s1108_s4 + $0x38] sm:$0xff] }
  0x13   :  { %v400_v14 = vpack.c.bf16 %v388_v13, %v387_v12  ;;  %v315_v12 = vadd.s32 8, %v314_v6 }
  0x16   :  { %97 = vperm.xlu1 %742, %v58_v15   ;;  %94 = vperm.xlu0 %741, %v57_v16   ;;  %v385_v15 = vld [vmem:[%s1108_s4 + $0x20] sm:$0xff]  ;;  %v386_v16 = vld [vmem:[%s1108_s4 + $0x28] sm:$0xff] }
  0x1a   :  { %103 = vperm.xlu1 %742, %v60_v17   ;;  %100 = vperm.xlu0 %741, %v59_v18   ;;  %v399_v17 = vpack.c.bf16 %v386_v16, %v385_v15  ;;  %v383_v18 = vld [vmem:[%s1108_s4 + $0x10] sm:$0xff] }
  0x1e   :  { %109 = vperm.xlu1 %742, %v62_v19   ;;  %106 = vperm.xlu0 %741, %v61_v20   ;;  %v384_v19 = vld [vmem:[%s1108_s4 + $0x18] sm:$0xff] }
  0x1f   :  { %v398_v20 = vpack.c.bf16 %v384_v19, %v383_v18  ;;  %v381_v18 = vld [vmem:[%s1108_s4] sm:$0xff]  ;;  %v382_v19 = vld [vmem:[%s1108_s4 + $0x8] sm:$0xff] }
  0x7d   :  { %v71_v23 = vpop.permute.xlu1 %70  ;;  %v65_v24 = vpop.permute.xlu0 %64 }
  0x7e   :  { %vm113_vm0 = vcmp.eq.s32.totalorder %v71_v23, %v861_v22  ;;  %vm111_vm1 = vcmp.eq.s32.totalorder %v65_v24, %v861_v22 }
  0x7f   :  { %v592_v27 = vsel %vm113_vm0, 1.0, %v746_v5  ;;  %v590_v28 = vsel %vm111_vm1, 1.0, %v746_v5  ;;  %vm747_vm1 = vmmov 0  }
  0x80   :  { %693 = vmatprep.mubr.msk.bf16.mxu1 %vm747_vm1, %v746_v5 }
  0x81   :  { %v74_v25 = vpop.permute.xlu1 %73  ;;  %v68_v26 = vpop.permute.xlu0 %67 }
  0x82   :  { %vm114_vm2 = vcmp.eq.s32.totalorder %v74_v25, %v861_v22  ;;  %vm112_vm3 = vcmp.eq.s32.totalorder %v68_v26, %v861_v22 }
  0x83   :  { %v593_v29 = vsel %vm114_vm2, 1.0, %v746_v5  ;;  %v591_v30 = vsel %vm112_vm3, 1.0, %v746_v5  ;;  %vm321_vm2 = vcmp.eq.s32.totalorder %v614_v21, %v314_v6  ;;  %vm322_vm3 = vcmp.eq.s32.totalorder %v614_v21, %v315_v12 }
  0x84   :  { %v160_v31 = vpack.c.bf16 %v593_v29, %v592_v27  ;;  %v159_v32 = vpack.c.bf16 %v591_v30, %v590_v28 }
  0x85   :  { %v80_v33 = vpop.permute.xlu1 %79  ;;  %v77_v34 = vpop.permute.xlu0 %76 }
  0x86   :  { %vm116_vm5 = vcmp.eq.s32.totalorder %v80_v33, %v861_v22  ;;  %vm115_vm6 = vcmp.eq.s32.totalorder %v77_v34, %v861_v22  ;;  %661 = vmatprep.mubr.msk.bf16.mxu0 %vm183_vm4, %v159_v32 }
  0x87   :  { %v595_v35 = vsel %vm116_vm5, 1.0, %v746_v5  ;;  %v594_v36 = vsel %vm115_vm6, 1.0, %v746_v5  ;;  %662 = vmatmul.mubr.msk.bf16.vlgmr.msra.gmra.mxu0 %vm183_vm4, %v160_v31 }
  0x88   :  { %v161_v37 = vpack.c.bf16 %v595_v35, %v594_v36  ;;  %698 = vmatpush3.bf16.msra.mxu0 %v404_v2  ;;  %v181_v35 = vld [vmem:[%s1109_s3 + $0x70] sm:$0xff]  ;;  %v170_v2 = vld [vmem:[%s1109_s3 + $0x18] sm:$0xff] }
  0x89   :  { %v86_v38 = vpop.permute.xlu1 %85  ;;  %v83_v39 = vpop.permute.xlu0 %82  ;;  %699 = vmatprep.subr.bf16.mxu0 %v746_v5 }
  0x8a   :  { %vm118_vm7 = vcmp.eq.s32.totalorder %v86_v38, %v861_v22  ;;  %vm117_vm8 = vcmp.eq.s32.totalorder %v83_v39, %v861_v22  ;;  %665 = vmatprep.mubr.msk.bf16.mxu0 %vm183_vm4, %v161_v37  ;;  %v182_v37 = vld [vmem:[%s1109_s3 + $0x78] sm:$0xff]  ;;  %v180_v39 = vld [vmem:[%s1109_s3 + $0x68] sm:$0xff] }
  0x8b   :  { %v597_v40 = vsel %vm118_vm7, 1.0, %v746_v5  ;;  %v596_v41 = vsel %vm117_vm8, 1.0, %v746_v5 }
  0x8c   :  { %v162_v42 = vpack.c.bf16 %v597_v40, %v596_v41  ;;  %700 = vmatpush3.bf16.msra.mxu0 %v403_v4  ;;  %v169_v4 = vld [vmem:[%s1109_s3 + $0x10] sm:$0xff] }
  0x8d   :  { %v92_v43 = vpop.permute.xlu1 %91  ;;  %v89_v44 = vpop.permute.xlu0 %88  ;;  %701 = vmatprep.subr.bf16.mxu0 %v746_v5 }
  0x8e   :  { %vm120_vm9 = vcmp.eq.s32.totalorder %v92_v43, %v861_v22  ;;  %vm119_vm10 = vcmp.eq.s32.totalorder %v89_v44, %v861_v22 }
  0x8f   :  { %v599_v45 = vsel %vm120_vm9, 1.0, %v746_v5  ;;  %v598_v46 = vsel %vm119_vm10, 1.0, %v746_v5  ;;  %666 = vmatmul.mubr.msk.bf16.gmra.mxu0 %vm183_vm4, %v162_v42  ;;  %v179_v42 = vld [vmem:[%s1109_s3 + $0x60] sm:$0xff] }
  0x90   :  { %v163_v47 = vpack.c.bf16 %v599_v45, %v598_v46  ;;  %702 = vmatpush3.bf16.msra.mxu0 %v402_v8  ;;  %v178_v46 = vld [vmem:[%s1109_s3 + $0x58] sm:$0xff] }
  0x91   :  { %v98_v48 = vpop.permute.xlu1 %97  ;;  %v95_v49 = vpop.permute.xlu0 %94  ;;  %703 = vmatprep.subr.bf16.mxu0 %v746_v5 }
  0x92   :  { %vm122_vm11 = vcmp.eq.s32.totalorder %v98_v48, %v861_v22  ;;  %vm121_vm12 = vcmp.eq.s32.totalorder %v95_v49, %v861_v22  ;;  %669 = vmatprep.mubr.msk.bf16.mxu0 %vm183_vm4, %v163_v47  ;;  %v177_v48 = vld [vmem:[%s1109_s3 + $0x50] sm:$0xff] }
  0x93   :  { %v601_v50 = vsel %vm122_vm11, 1.0, %v746_v5  ;;  %v600_v51 = vsel %vm121_vm12, 1.0, %v746_v5 }
  0x94   :  { %v164_v52 = vpack.c.bf16 %v601_v50, %v600_v51  ;;  %704 = vmatpush3.bf16.msra.mxu0 %v401_v11  ;;  %v176_v51 = vld [vmem:[%s1109_s3 + $0x48] sm:$0xff]  ;;  %v167_v11 = vld [vmem:[%s1109_s3] sm:$0xff] }
  0x95   :  { %v104_v53 = vpop.permute.xlu1 %103  ;;  %v101_v54 = vpop.permute.xlu0 %100  ;;  %705 = vmatprep.subr.bf16.mxu0 %v746_v5 }
  0x96   :  { %vm124_vm13 = vcmp.eq.s32.totalorder %v104_v53, %v861_v22  ;;  %vm123_vm14 = vcmp.eq.s32.totalorder %v101_v54, %v861_v22  ;;  %v175_v53 = vld [vmem:[%s1109_s3 + $0x40] sm:$0xff] }
  0x97   :  { %v603_v55 = vsel %vm124_vm13, 1.0, %v746_v5  ;;  %v602_v56 = vsel %vm123_vm14, 1.0, %v746_v5  ;;  %670 = vmatmul.mubr.msk.bf16.gmra.mxu0 %vm183_vm4, %v164_v52 }
  0x98   :  { %v165_v57 = vpack.c.bf16 %v603_v55, %v602_v56  ;;  %706 = vmatpush3.bf16.msra.mxu0 %v400_v14  ;;  %v174_v56 = vld [vmem:[%s1109_s3 + $0x38] sm:$0xff] }
  0x99   :  { %v110_v58 = vpop.permute.xlu1 %109  ;;  %v107_v59 = vpop.permute.xlu0 %106  ;;  %707 = vmatprep.subr.bf16.mxu0 %v746_v5 }
  0x9a   :  { %vm126_vm15 = vcmp.eq.s32.totalorder %v110_v58, %v861_v22  ;;  %vm125_vm0 = vcmp.eq.s32.totalorder %v107_v59, %v861_v22  ;;  %673 = vmatprep.mubr.msk.bf16.mxu0 %vm183_vm4, %v165_v57  ;;  %v173_v58 = vld [vmem:[%s1109_s3 + $0x30] sm:$0xff] }
  0x9b   :  { %v605_v60 = vsel %vm126_vm15, 1.0, %v746_v5  ;;  %v604_v61 = vsel %vm125_vm0, 1.0, %v746_v5 }
  0x9c   :  { %v166_v62 = vpack.c.bf16 %v605_v60, %v604_v61  ;;  %708 = vmatpush3.bf16.msra.mxu0 %v399_v17  ;;  %v172_v61 = vld [vmem:[%s1109_s3 + $0x28] sm:$0xff]  ;;  %v748_v17 = vmov 1.0|1.0  }
  0x9d   :  { %709 = vmatprep.subr.bf16.mxu0 %v746_v5 }
  0x9f   :  { %674 = vmatmul.mubr.msk.bf16.gmra.mxu0 %vm183_vm4, %v166_v62  ;;  %vm617_vm4 = vmpackc.low %vm322_vm3, %vm321_vm2 }
  0xa0   :  { %713 = vmatprep.mubr.msk.bf16.mxu0 %vm747_vm1, %v746_v5  ;;  %710 = vmatpush3.bf16.msra.mxu0 %v398_v20  ;;  %v397_v20 = vpack.c.bf16 %v382_v19, %v381_v18 }
  0xa1   :  { %711 = vmatprep.subr.bf16.mxu0 %v746_v5 }
  0xa4   :  { %712 = vmatpush3.bf16.msra.mxu0 %v397_v20 }
 0x147   :  { %v956_v22 = vpop.f32.mrf.mxu0 }
 0x148   :  { %v251_v10 = vadd.f32 %v956_v22, %v169_v4  ;;  %v470_v22 = vld [vmem:[%s1111_s6 + $0x70] sm:$0xff] }
 0x149   :  { %v958_v23 = vpop.f32.mrf.mxu0 }
 0x14a   :  { %v243_v15 = vadd.f32 %v958_v23, %v167_v11  ;;  %v471_v23 = vld [vmem:[%s1111_s6 + $0x78] sm:$0xff] }
 0x14b   :  { %v664_v24 = vpop.f32.mrf.mxu0 }
 0x14c   :  { %v254_v7 = vadd.f32 %v664_v24, %v170_v2  ;;  %v468_v24 = vld [vmem:[%s1111_s6 + $0x60] sm:$0xff] }
 0x14d   :  { %v960_v25 = vpop.f32.mrf.mxu0 }
 0x14e   :  { %v306_v13 = vpack.c.bf16 %v254_v7, %v251_v10  ;;  %v246_v14 = vadd.f32 %v960_v25, %v168_v9  ;;  %v479_v25 = vpack.c.bf16 %v471_v23, %v470_v22 }
 0x14f   :  { %v667_v26 = vpop.f32.mrf.mxu0 }
 0x150   :  { %v267_v62 = vadd.f32 %v667_v26, %v173_v58  ;;  %v305_v16 = vpack.c.bf16 %v246_v14, %v243_v15  ;;  %v469_v26 = vld [vmem:[%s1111_s6 + $0x68] sm:$0xff] }
 0x151   :  { %v258_v27 = vpop.f32.mrf.mxu0 }
 0x152   :  { %v259_v3 = vadd.f32 %v258_v27, %v171_v63  ;;  %v478_v27 = vpack.c.bf16 %v469_v26, %v468_v24  ;;  %v621_v26 = vld [vmem:[%s1114_s8] ss:$0 sm:$0xff] }
 0x153   :  { %v668_v28 = vpop.f32.mrf.mxu0 }
 0x154   :  { %v270_v59 = vadd.f32 %v668_v28, %v174_v56  ;;  %v466_v28 = vld [vmem:[%s1111_s6 + $0x50] sm:$0xff] }
 0x155   :  { %v261_v29 = vpop.f32.mrf.mxu0 }
 0x156   :  { %v308_v0 = vpack.c.bf16 %v270_v59, %v267_v62  ;;  %v262_v1 = vadd.f32 %v261_v29, %v172_v61  ;;  %v467_v29 = vld [vmem:[%s1111_s6 + $0x58] sm:$0xff]  ;;  %v620_v61 = vld [vmem:[%s1113_s7] ss:$0 sm:$0xff] }
 0x157   :  { %v671_v30 = vpop.f32.mrf.mxu0 }
 0x158   :  { %v283_v52 = vadd.f32 %v671_v30, %v177_v48  ;;  %v307_v8 = vpack.c.bf16 %v262_v1, %v259_v3  ;;  %v477_v30 = vpack.c.bf16 %v467_v29, %v466_v28  ;;  %v456_v48 = vld [vmem:[%s1111_s6] sm:$0xff] }
 0x159   :  { %v274_v31 = vpop.f32.mrf.mxu0  ;;  %v622_v29 = vld [vmem:[%s1115_s9] ss:$0 sm:$0xff] }
 0x15a   :  { %v275_v57 = vadd.f32 %v274_v31, %v175_v53  ;;  %v464_v31 = vld [vmem:[%s1111_s6 + $0x40] sm:$0xff] }
 0x15b   :  { %v672_v32 = vpop.f32.mrf.mxu0 }
 0x15c   :  { %v286_v49 = vadd.f32 %v672_v32, %v178_v46  ;;  %v465_v32 = vld [vmem:[%s1111_s6 + $0x48] sm:$0xff]  ;;  %v459_v46 = vld [vmem:[%s1111_s6 + $0x18] sm:$0xff] }
 0x15d   :  { %v277_v33 = vpop.f32.mrf.mxu0 }
 0x15e   :  { %v310_v54 = vpack.c.bf16 %v286_v49, %v283_v52  ;;  %v278_v55 = vadd.f32 %v277_v33, %v176_v51  ;;  %v476_v33 = vpack.c.bf16 %v465_v32, %v464_v31  ;;  %v457_v49 = vld [vmem:[%s1111_s6 + $0x8] sm:$0xff]  ;;  %v619_v51 = vld [vmem:[%s1112_s5] ss:$0 sm:$0xff] }
 0x15f   :  { %v675_v34 = vpop.f32.mrf.mxu0 }
 0x160   :  { %v299_v40 = vadd.f32 %v675_v34, %v181_v35  ;;  %v309_v60 = vpack.c.bf16 %v278_v55, %v275_v57  ;;  %v462_v34 = vld [vmem:[%s1111_s6 + $0x30] sm:$0xff]  ;;  %v463_v35 = vld [vmem:[%s1111_s6 + $0x38] sm:$0xff] }
 0x161   :  { %v290_v36 = vpop.f32.mrf.mxu0 }
 0x162   :  { %v291_v47 = vadd.f32 %v290_v36, %v179_v42  ;;  %v475_v36 = vpack.c.bf16 %v463_v35, %v462_v34  ;;  %v460_v42 = vld [vmem:[%s1111_s6 + $0x20] sm:$0xff] }
 0x163   :  { %v676_v38 = vpop.f32.mrf.mxu0 }
 0x164   :  { %v302_v41 = vadd.f32 %v676_v38, %v182_v37 }
 0x165   :  { %v293_v43 = vpop.f32.mrf.mxu0 }
 0x166   :  { %v294_v44 = vadd.f32 %v293_v43, %v180_v39  ;;  %v312_v45 = vpack.c.bf16 %v302_v41, %v299_v40  ;;  %v461_v43 = vld [vmem:[%s1111_s6 + $0x28] sm:$0xff] }
 0x168   :  { %678 = vmatpush3.bf16.msra.mxu1 %v312_v45  ;;  %v311_v50 = vpack.c.bf16 %v294_v44, %v291_v47  ;;  %v474_v44 = vpack.c.bf16 %v461_v43, %v460_v42  ;;  %v458_v45 = vld [vmem:[%s1111_s6 + $0x10] sm:$0xff] }
 0x169   :  { %679 = vmatprep.subr.bf16.mxu1 %v746_v5  ;;  %v473_v47 = vpack.c.bf16 %v459_v46, %v458_v45 }
 0x16c   :  { %680 = vmatpush3.bf16.msra.mxu1 %v311_v50  ;;  %v472_v50 = vpack.c.bf16 %v457_v49, %v456_v48 }
 0x16d   :  { %681 = vmatprep.subr.bf16.mxu1 %v746_v5 }
 0x170   :  { %682 = vmatpush3.bf16.msra.mxu1 %v310_v54 }
 0x171   :  { %683 = vmatprep.subr.bf16.mxu1 %v746_v5 }
 0x174   :  { %684 = vmatpush3.bf16.msra.mxu1 %v309_v60 }
 0x175   :  { %685 = vmatprep.subr.bf16.mxu1 %v746_v5 }
 0x178   :  { %686 = vmatpush3.bf16.msra.mxu1 %v308_v0 }
 0x179   :  { %687 = vmatprep.subr.bf16.mxu1 %v746_v5 }
 0x17c   :  { %688 = vmatpush3.bf16.msra.mxu1 %v307_v8 }
 0x17d   :  { %689 = vmatprep.subr.bf16.mxu1 %v746_v5 }
 0x180   :  { %690 = vmatpush3.bf16.msra.mxu1 %v306_v13 }
 0x181   :  { %691 = vmatprep.subr.bf16.mxu1 %v746_v5 }
 0x184   :  { %692 = vmatpush3.bf16.msra.mxu1 %v305_v16 }
 0x185   :  { %717 = vmatprep.subr.bf16.mxu1 %v746_v5 }
 0x187   :  { %694 = vmatmul.mubr.msk.bf16.vlgmr.msra.gmra.mxu1 %vm617_vm4, %v748_v17 }
 0x188   :  { %733 = vmatprep.mubr.msk.bf16.mxu1 %vm747_vm1, %v746_v5  ;;  %718 = vmatpush3.bf16.msra.mxu1 %v479_v25 }
 0x189   :  { %719 = vmatprep.subr.bf16.mxu1 %v746_v5 }
 0x18c   :  { %720 = vmatpush3.bf16.msra.mxu1 %v478_v27 }
 0x18d   :  { %721 = vmatprep.subr.bf16.mxu1 %v746_v5 }
 0x190   :  { %722 = vmatpush3.bf16.msra.mxu1 %v477_v30 }
 0x191   :  { %723 = vmatprep.subr.bf16.mxu1 %v746_v5 }
 0x194   :  { %724 = vmatpush3.bf16.msra.mxu1 %v476_v33 }
 0x195   :  { %725 = vmatprep.subr.bf16.mxu1 %v746_v5 }
 0x198   :  { %726 = vmatpush3.bf16.msra.mxu1 %v475_v36 }
 0x199   :  { %727 = vmatprep.subr.bf16.mxu1 %v746_v5 }
 0x19c   :  { %728 = vmatpush3.bf16.msra.mxu1 %v474_v44 }
 0x19d   :  { %729 = vmatprep.subr.bf16.mxu1 %v746_v5 }
 0x1a0   :  { %730 = vmatpush3.bf16.msra.mxu1 %v473_v47 }
 0x1a1   :  { %731 = vmatprep.subr.bf16.mxu1 %v746_v5 }
 0x1a4   :  { %732 = vmatpush3.bf16.msra.mxu1 %v472_v50 }
 0x247   :  { %v364_v37 = vpop.f32.mrf.mxu1 }
 0x249   :  { %v695_v38 = vpop.f32.mrf.mxu1 }
 0x24b   :  { %v367_v39 = vpop.f32.mrf.mxu1 }
 0x24c   :  { %v380_v40 = vpack.c.bf16 %v367_v39, %v364_v37 }
 0x24d   :  { %v696_v41 = vpop.f32.mrf.mxu1 }
 0x24e   :  { %714 = vmatmul.mubr.bf16.vlgmr.msra.gmra.mxu0 %v380_v40 }
 0x30e   :  { %v446_v52 = vpop.f32.mrf.mxu0 }
 0x30f   :  { %v447_v54 = vadd.f32 %v619_v51, %v446_v52 }
 0x310   :  { %v715_v53 = vpop.f32.mrf.mxu0 }
 0x311   :  { %v453_v57 = vmax.f32 %v447_v54, 0.0 }
 0x312   :  { %v449_v55 = vpop.f32.mrf.mxu0 }
 0x313   :  { %v450_v56 = vadd.f32 %v619_v51, %v449_v55 }
 0x314   :  { %v716_v5 = vpop.f32.mrf.mxu0 }
 0x315   :  { %v454_v58 = vmax.f32 %v450_v56, 0.0 }
 0x317   :  { %v455_v59 = vpack.c.bf16 %v454_v58, %v453_v57 }
 0x319   :  { %734 = vmatmul.mubr.bf16.vlgmr.msra.gmra.mxu1 %v455_v59 }
 0x3d9   :  { %v521_v60 = vpop.f32.mrf.mxu1 }
 0x3da   :  { %v522_v0 = vadd.f32 %v620_v61, %v521_v60 }
 0x3db   :  { %v735_v62 = vpop.f32.mrf.mxu1 }
 0x3dd   :  { %v524_v63 = vpop.f32.mrf.mxu1 }
 0x3de   :  { %v525_v1 = vadd.f32 %v620_v61, %v524_v63 }
 0x3df   :  { %v736_v2 = vpop.f32.mrf.mxu1 }
 0x3e0   :  { %v536_v3 = vadd.f32 %v525_v1, %v522_v0 }
 0x3e2   :  { %v537_v4 = vrot.slane %v536_v3, 4 }
 0x3e4   :  { %v538_v6 = vadd.f32 %v537_v4, %v536_v3 }
 0x3e6   :  { %v539_v7 = vrot.slane %v538_v6, 2 }
 0x3e8   :  { %v540_v8 = vadd.f32 %v539_v7, %v538_v6 }
 0x3ea   :  { %v541_v9 = vrot.slane %v540_v8, 1 }
 0x3ec   :  { %v542_v10 = vadd.f32 %v541_v9, %v540_v8 }
 0x3ee   :  { %v543_v11 = vmul.f32 0.0625, %v542_v10 }
 0x3f0   :  { %v544_v12 = vsub.f32 %v522_v0, %v543_v11  ;;  %v545_v13 = vsub.f32 %v525_v1, %v543_v11 }
 0x3f2   :  { %v548_v14 = vmul.f32 %v544_v12, %v544_v12  ;;  %v549_v21 = vmul.f32 %v545_v13, %v545_v13 }
 0x3f4   :  { %v550_v15 = vadd.f32 %v549_v21, %v548_v14 }
 0x3f6   :  { %v551_v16 = vrot.slane %v550_v15, 4 }
 0x3f8   :  { %v552_v17 = vadd.f32 %v551_v16, %v550_v15 }
 0x3fa   :  { %v553_v18 = vrot.slane %v552_v17, 2 }
 0x3fc   :  { %v554_v19 = vadd.f32 %v553_v18, %v552_v17 }
 0x3fe   :  { %v555_v20 = vrot.slane %v554_v19, 1 }
 0x400   :  { %v556_v22 = vadd.f32 %v555_v20, %v554_v19 }
 0x402   :  { %v557_v23 = vmul.f32 0.0625, %v556_v22 }
 0x404   :  { %v558_v24 = vadd.f32 1e-05, %v557_v23 }
 0x406   :  { %743 = vrsqrt.f32 %v558_v24 }
 0x413   :  { %v744_v25 = vpop.eup %743 }
 0x414   :  { %v560_v27 = vmul.f32 %v744_v25, %v544_v12  ;;  %v561_v28 = vmul.f32 %v744_v25, %v545_v13 }
 0x416   :  { %v569_v30 = vmul.f32 %v621_v26, %v560_v27  ;;  %v570_v31 = vmul.f32 %v621_v26, %v561_v28 }
 0x418   :  { %v578_v32 = vadd.f32 %v622_v29, %v569_v30  ;;  %v579_v33 = vadd.f32 %v622_v29, %v570_v31 }
 0x41a   :  { %v580_v34 = vmax.f32 %v578_v32, 0.0  ;;  %v581_v35 = vmax.f32 %v579_v33, 0.0 }
 0x41c   :  { %584 = vst [vmem:[%s1116_s10] sm:$0xff] %v580_v34  ;;  %585 = vst [vmem:[%s1116_s10 + $0x8] sm:$0xff] %v581_v35 }

// kernel: gnn_forward.3
= control target key start
LH: loop header
LB: loop body
LE: loop exit
PB: predicated region body
PF: predicated region fallthrough
CT: control target
= control target key end

     0   :  { %v781_v2 = vmov 0   ;;  %v782_v5 = vmov 0.0   ;;  %s1139_s0 = inlined_call_operand.vmem [shape: f32[16,128], index: 0, kind: input, shape index: {}]   ;;  %s1140_s1 = inlined_call_operand.vmem [shape: s32[128,1], index: 1, kind: input, shape index: {}]   ;;  %s1141_s2 = inlined_call_operand.vmem [shape: s32[1,128], index: 2, kind: input, shape index: {}]   ;;  %s1142_s3 = inlined_call_operand.vmem [shape: f32[128,128], index: 3, kind: input, shape index: {}]   ;;  %s1143_s4 = inlined_call_operand.vmem [shape: f32[128,128], index: 4, kind: input, shape index: {}]   ;;  %s1144_s5 = inlined_call_operand.vmem [shape: f32[1,128], index: 5, kind: input, shape index: {}]   ;;  %s1145_s6 = inlined_call_operand.vmem [shape: f32[128,128], index: 6, kind: input, shape index: {}]   ;;  %s1146_s7 = inlined_call_operand.vmem [shape: f32[1,128], index: 7, kind: input, shape index: {}]   ;;  %s1147_s8 = inlined_call_operand.vmem [shape: f32[1,128], index: 8, kind: input, shape index: {}]   ;;  %s1148_s9 = inlined_call_operand.vmem [shape: f32[1,128], index: 9, kind: input, shape index: {}]   ;;  %s1149_s10 = inlined_call_operand.hbm [shape: f32[16,128], index: 10, kind: output, shape index: {}]  }
   0x1   :  { %v50_v0 = vld [vmem:[%s1140_s1 + $0x10] sm:$0xff]  ;;  %v48_v1 = vld [vmem:[%s1140_s1] sm:$0xff]  ;;  %756 = vset.pattern.permute.xlu1 %v781_v2  ;;  %755 = vset.pattern.permute.xlu0 %v781_v2  ;;  %v51_v3 = vld [vmem:[%s1140_s1 + $0x18] sm:$0xff] }
   0x2   :  { %71 = vperm.xlu1 %756, %v50_v0   ;;  %65 = vperm.xlu0 %755, %v48_v1   ;;  %v49_v4 = vld [vmem:[%s1140_s1 + $0x8] sm:$0xff]  ;;  %v43_v6 = vld [vmem:[%s1139_s0] sm:$0xff] }
   0x3   :  { %688 = vmatprep.subr.bf16.mxu1 %v782_v5  ;;  %v44_v7 = vld [vmem:[%s1139_s0 + $0x8] sm:$0xff] }
   0x4   :  { %v45_v8 = vpack.c.bf16 %v44_v7, %v43_v6 }
   0x6   :  { %74 = vperm.xlu1 %756, %v51_v3   ;;  %68 = vperm.xlu0 %755, %v49_v4  }
   0x7   :  { %15 = vsyncpa [#allocation4], 0  ;;  %v53_v9 = vld [vmem:[%s1140_s1 + $0x28] sm:$0xff]  ;;  %v52_v10 = vld [vmem:[%s1140_s1 + $0x20] sm:$0xff]  ;;  %670 = vmatprep.subr.bf16.mxu0 %v45_v8  ;;  %v46_v21 = vlaneseq  ;;  %vm184_vm4 = vcmask 130048  }
   0x8   :  { %671 = vmatpush3.bf16.msra.mxu0 %v45_v8  ;;  %v55_v11 = vld [vmem:[%s1140_s1 + $0x38] sm:$0xff]  ;;  %v54_v12 = vld [vmem:[%s1140_s1 + $0x30] sm:$0xff]  ;;  %v57_v13 = vld [vmem:[%s1140_s1 + $0x48] sm:$0xff] }
   0x9   :  { %708 = vmatprep.subr.bf16.mxu0 %v782_v5  ;;  %v56_v14 = vld [vmem:[%s1140_s1 + $0x40] sm:$0xff]  ;;  %v59_v15 = vld [vmem:[%s1140_s1 + $0x58] sm:$0xff]  ;;  %v58_v16 = vld [vmem:[%s1140_s1 + $0x50] sm:$0xff]  ;;  %v900_v22 = vand.u32 127, %v46_v21 }
   0xa   :  { %80 = vperm.xlu1 %756, %v53_v9   ;;  %77 = vperm.xlu0 %755, %v52_v10   ;;  %v61_v17 = vld [vmem:[%s1140_s1 + $0x68] sm:$0xff]  ;;  %v60_v18 = vld [vmem:[%s1140_s1 + $0x60] sm:$0xff]  ;;  %v63_v19 = vld [vmem:[%s1140_s1 + $0x78] sm:$0xff] }
   0xb   :  { %v62_v20 = vld [vmem:[%s1140_s1 + $0x70] sm:$0xff]  ;;  %v397_v0 = vld [vmem:[%s1143_s4 + $0x78] sm:$0xff]  ;;  %v394_v1 = vld [vmem:[%s1143_s4 + $0x60] sm:$0xff] }
   0xc   :  { %v396_v63 = vld [vmem:[%s1143_s4 + $0x70] sm:$0xff]  ;;  %v395_v3 = vld [vmem:[%s1143_s4 + $0x68] sm:$0xff]  ;;  %v393_v7 = vld [vmem:[%s1143_s4 + $0x58] sm:$0xff] }
   0xd   :  { %v405_v2 = vpack.c.bf16 %v397_v0, %v396_v63  ;;  %v404_v4 = vpack.c.bf16 %v395_v3, %v394_v1  ;;  %v392_v6 = vld [vmem:[%s1143_s4 + $0x50] sm:$0xff]  ;;  %v390_v9 = vld [vmem:[%s1143_s4 + $0x40] sm:$0xff]  ;;  %v391_v10 = vld [vmem:[%s1143_s4 + $0x48] sm:$0xff] }
   0xe   :  { %86 = vperm.xlu1 %756, %v55_v11   ;;  %83 = vperm.xlu0 %755, %v54_v12   ;;  %v403_v8 = vpack.c.bf16 %v393_v7, %v392_v6  ;;  %v402_v11 = vpack.c.bf16 %v391_v10, %v390_v9  ;;  %v388_v12 = vld [vmem:[%s1143_s4 + $0x30] sm:$0xff]  ;;  %v172_v63 = vld [vmem:[%s1142_s3 + $0x20] sm:$0xff]  ;;  %v315_v6 = vshrl.u32 %v46_v21, 7  ;;  %v169_v9 = vld [vmem:[%s1142_s3 + $0x8] sm:$0xff] }
   0xf   :  { %v625_v21 = vld [vmem:[%s1141_s2] ss:$0 sm:$0xff] }
  0x12   :  { %92 = vperm.xlu1 %756, %v57_v13   ;;  %89 = vperm.xlu0 %755, %v56_v14   ;;  %v389_v13 = vld [vmem:[%s1143_s4 + $0x38] sm:$0xff] }
  0x13   :  { %v401_v14 = vpack.c.bf16 %v389_v13, %v388_v12  ;;  %v316_v12 = vadd.s32 8, %v315_v6 }
  0x16   :  { %98 = vperm.xlu1 %756, %v59_v15   ;;  %95 = vperm.xlu0 %755, %v58_v16   ;;  %v386_v15 = vld [vmem:[%s1143_s4 + $0x20] sm:$0xff]  ;;  %v387_v16 = vld [vmem:[%s1143_s4 + $0x28] sm:$0xff] }
  0x1a   :  { %104 = vperm.xlu1 %756, %v61_v17   ;;  %101 = vperm.xlu0 %755, %v60_v18   ;;  %v400_v17 = vpack.c.bf16 %v387_v16, %v386_v15  ;;  %v384_v18 = vld [vmem:[%s1143_s4 + $0x10] sm:$0xff] }
  0x1e   :  { %110 = vperm.xlu1 %756, %v63_v19   ;;  %107 = vperm.xlu0 %755, %v62_v20   ;;  %v385_v19 = vld [vmem:[%s1143_s4 + $0x18] sm:$0xff] }
  0x1f   :  { %v399_v20 = vpack.c.bf16 %v385_v19, %v384_v18  ;;  %v382_v18 = vld [vmem:[%s1143_s4] sm:$0xff]  ;;  %v383_v19 = vld [vmem:[%s1143_s4 + $0x8] sm:$0xff] }
  0x7d   :  { %v72_v23 = vpop.permute.xlu1 %71  ;;  %v66_v24 = vpop.permute.xlu0 %65 }
  0x7e   :  { %vm114_vm0 = vcmp.eq.s32.totalorder %v72_v23, %v900_v22  ;;  %vm112_vm1 = vcmp.eq.s32.totalorder %v66_v24, %v900_v22 }
  0x7f   :  { %v603_v27 = vsel %vm114_vm0, 1.0, %v782_v5  ;;  %v601_v28 = vsel %vm112_vm1, 1.0, %v782_v5  ;;  %vm783_vm1 = vmmov 0  }
  0x80   :  { %704 = vmatprep.mubr.msk.bf16.mxu1 %vm783_vm1, %v782_v5 }
  0x81   :  { %v75_v25 = vpop.permute.xlu1 %74  ;;  %v69_v26 = vpop.permute.xlu0 %68 }
  0x82   :  { %vm115_vm2 = vcmp.eq.s32.totalorder %v75_v25, %v900_v22  ;;  %vm113_vm3 = vcmp.eq.s32.totalorder %v69_v26, %v900_v22 }
  0x83   :  { %v604_v29 = vsel %vm115_vm2, 1.0, %v782_v5  ;;  %v602_v30 = vsel %vm113_vm3, 1.0, %v782_v5  ;;  %vm322_vm2 = vcmp.eq.s32.totalorder %v625_v21, %v315_v6  ;;  %vm323_vm3 = vcmp.eq.s32.totalorder %v625_v21, %v316_v12 }
  0x84   :  { %v161_v31 = vpack.c.bf16 %v604_v29, %v603_v27  ;;  %v160_v32 = vpack.c.bf16 %v602_v30, %v601_v28 }
  0x85   :  { %v81_v33 = vpop.permute.xlu1 %80  ;;  %v78_v34 = vpop.permute.xlu0 %77 }
  0x86   :  { %vm117_vm5 = vcmp.eq.s32.totalorder %v81_v33, %v900_v22  ;;  %vm116_vm6 = vcmp.eq.s32.totalorder %v78_v34, %v900_v22  ;;  %672 = vmatprep.mubr.msk.bf16.mxu0 %vm184_vm4, %v160_v32 }
  0x87   :  { %v606_v35 = vsel %vm117_vm5, 1.0, %v782_v5  ;;  %v605_v36 = vsel %vm116_vm6, 1.0, %v782_v5  ;;  %673 = vmatmul.mubr.msk.bf16.vlgmr.msra.gmra.mxu0 %vm184_vm4, %v161_v31 }
  0x88   :  { %v162_v37 = vpack.c.bf16 %v606_v35, %v605_v36  ;;  %709 = vmatpush3.bf16.msra.mxu0 %v405_v2  ;;  %v182_v35 = vld [vmem:[%s1142_s3 + $0x70] sm:$0xff]  ;;  %v171_v2 = vld [vmem:[%s1142_s3 + $0x18] sm:$0xff] }
  0x89   :  { %v87_v38 = vpop.permute.xlu1 %86  ;;  %v84_v39 = vpop.permute.xlu0 %83  ;;  %710 = vmatprep.subr.bf16.mxu0 %v782_v5 }
  0x8a   :  { %vm119_vm7 = vcmp.eq.s32.totalorder %v87_v38, %v900_v22  ;;  %vm118_vm8 = vcmp.eq.s32.totalorder %v84_v39, %v900_v22  ;;  %676 = vmatprep.mubr.msk.bf16.mxu0 %vm184_vm4, %v162_v37  ;;  %v183_v37 = vld [vmem:[%s1142_s3 + $0x78] sm:$0xff]  ;;  %v181_v39 = vld [vmem:[%s1142_s3 + $0x68] sm:$0xff] }
  0x8b   :  { %v608_v40 = vsel %vm119_vm7, 1.0, %v782_v5  ;;  %v607_v41 = vsel %vm118_vm8, 1.0, %v782_v5 }
  0x8c   :  { %v163_v42 = vpack.c.bf16 %v608_v40, %v607_v41  ;;  %711 = vmatpush3.bf16.msra.mxu0 %v404_v4  ;;  %v170_v4 = vld [vmem:[%s1142_s3 + $0x10] sm:$0xff] }
  0x8d   :  { %v93_v43 = vpop.permute.xlu1 %92  ;;  %v90_v44 = vpop.permute.xlu0 %89  ;;  %712 = vmatprep.subr.bf16.mxu0 %v782_v5 }
  0x8e   :  { %vm121_vm9 = vcmp.eq.s32.totalorder %v93_v43, %v900_v22  ;;  %vm120_vm10 = vcmp.eq.s32.totalorder %v90_v44, %v900_v22 }
  0x8f   :  { %v610_v45 = vsel %vm121_vm9, 1.0, %v782_v5  ;;  %v609_v46 = vsel %vm120_vm10, 1.0, %v782_v5  ;;  %677 = vmatmul.mubr.msk.bf16.gmra.mxu0 %vm184_vm4, %v163_v42  ;;  %v180_v42 = vld [vmem:[%s1142_s3 + $0x60] sm:$0xff] }
  0x90   :  { %v164_v47 = vpack.c.bf16 %v610_v45, %v609_v46  ;;  %713 = vmatpush3.bf16.msra.mxu0 %v403_v8  ;;  %v179_v46 = vld [vmem:[%s1142_s3 + $0x58] sm:$0xff] }
  0x91   :  { %v99_v48 = vpop.permute.xlu1 %98  ;;  %v96_v49 = vpop.permute.xlu0 %95  ;;  %714 = vmatprep.subr.bf16.mxu0 %v782_v5 }
  0x92   :  { %vm123_vm11 = vcmp.eq.s32.totalorder %v99_v48, %v900_v22  ;;  %vm122_vm12 = vcmp.eq.s32.totalorder %v96_v49, %v900_v22  ;;  %680 = vmatprep.mubr.msk.bf16.mxu0 %vm184_vm4, %v164_v47  ;;  %v178_v48 = vld [vmem:[%s1142_s3 + $0x50] sm:$0xff] }
  0x93   :  { %v612_v50 = vsel %vm123_vm11, 1.0, %v782_v5  ;;  %v611_v51 = vsel %vm122_vm12, 1.0, %v782_v5 }
  0x94   :  { %v165_v52 = vpack.c.bf16 %v612_v50, %v611_v51  ;;  %715 = vmatpush3.bf16.msra.mxu0 %v402_v11  ;;  %v177_v51 = vld [vmem:[%s1142_s3 + $0x48] sm:$0xff]  ;;  %v168_v11 = vld [vmem:[%s1142_s3] sm:$0xff] }
  0x95   :  { %v105_v53 = vpop.permute.xlu1 %104  ;;  %v102_v54 = vpop.permute.xlu0 %101  ;;  %716 = vmatprep.subr.bf16.mxu0 %v782_v5 }
  0x96   :  { %vm125_vm13 = vcmp.eq.s32.totalorder %v105_v53, %v900_v22  ;;  %vm124_vm14 = vcmp.eq.s32.totalorder %v102_v54, %v900_v22  ;;  %v176_v53 = vld [vmem:[%s1142_s3 + $0x40] sm:$0xff] }
  0x97   :  { %v614_v55 = vsel %vm125_vm13, 1.0, %v782_v5  ;;  %v613_v56 = vsel %vm124_vm14, 1.0, %v782_v5  ;;  %681 = vmatmul.mubr.msk.bf16.gmra.mxu0 %vm184_vm4, %v165_v52 }
  0x98   :  { %v166_v57 = vpack.c.bf16 %v614_v55, %v613_v56  ;;  %717 = vmatpush3.bf16.msra.mxu0 %v401_v14  ;;  %v175_v56 = vld [vmem:[%s1142_s3 + $0x38] sm:$0xff] }
  0x99   :  { %v111_v58 = vpop.permute.xlu1 %110  ;;  %v108_v59 = vpop.permute.xlu0 %107  ;;  %718 = vmatprep.subr.bf16.mxu0 %v782_v5 }
  0x9a   :  { %vm127_vm15 = vcmp.eq.s32.totalorder %v111_v58, %v900_v22  ;;  %vm126_vm0 = vcmp.eq.s32.totalorder %v108_v59, %v900_v22  ;;  %684 = vmatprep.mubr.msk.bf16.mxu0 %vm184_vm4, %v166_v57  ;;  %v174_v58 = vld [vmem:[%s1142_s3 + $0x30] sm:$0xff] }
  0x9b   :  { %v616_v60 = vsel %vm127_vm15, 1.0, %v782_v5  ;;  %v615_v61 = vsel %vm126_vm0, 1.0, %v782_v5 }
  0x9c   :  { %v167_v62 = vpack.c.bf16 %v616_v60, %v615_v61  ;;  %719 = vmatpush3.bf16.msra.mxu0 %v400_v17  ;;  %v173_v61 = vld [vmem:[%s1142_s3 + $0x28] sm:$0xff]  ;;  %v784_v17 = vmov 1.0|1.0  }
  0x9d   :  { %720 = vmatprep.subr.bf16.mxu0 %v782_v5 }
  0x9f   :  { %685 = vmatmul.mubr.msk.bf16.gmra.mxu0 %vm184_vm4, %v167_v62  ;;  %vm628_vm4 = vmpackc.low %vm323_vm3, %vm322_vm2 }
  0xa0   :  { %724 = vmatprep.mubr.msk.bf16.mxu0 %vm783_vm1, %v782_v5  ;;  %721 = vmatpush3.bf16.msra.mxu0 %v399_v20  ;;  %v398_v20 = vpack.c.bf16 %v383_v19, %v382_v18 }
  0xa1   :  { %722 = vmatprep.subr.bf16.mxu0 %v782_v5 }
  0xa4   :  { %723 = vmatpush3.bf16.msra.mxu0 %v398_v20 }
 0x147   :  { %v674_v22 = vpop.f32.mrf.mxu0 }
 0x148   :  { %v252_v10 = vadd.f32 %v674_v22, %v170_v4  ;;  %v471_v22 = vld [vmem:[%s1145_s6 + $0x70] sm:$0xff] }
 0x149   :  { %v995_v23 = vpop.f32.mrf.mxu0 }
 0x14a   :  { %v244_v15 = vadd.f32 %v995_v23, %v168_v11  ;;  %v472_v23 = vld [vmem:[%s1145_s6 + $0x78] sm:$0xff] }
 0x14b   :  { %v675_v24 = vpop.f32.mrf.mxu0 }
 0x14c   :  { %v255_v7 = vadd.f32 %v675_v24, %v171_v2  ;;  %v469_v24 = vld [vmem:[%s1145_s6 + $0x60] sm:$0xff] }
 0x14d   :  { %v997_v25 = vpop.f32.mrf.mxu0 }
 0x14e   :  { %v307_v13 = vpack.c.bf16 %v255_v7, %v252_v10  ;;  %v247_v14 = vadd.f32 %v997_v25, %v169_v9  ;;  %v480_v25 = vpack.c.bf16 %v472_v23, %v471_v22 }
 0x14f   :  { %v678_v26 = vpop.f32.mrf.mxu0 }
 0x150   :  { %v268_v62 = vadd.f32 %v678_v26, %v174_v58  ;;  %v306_v16 = vpack.c.bf16 %v247_v14, %v244_v15  ;;  %v470_v26 = vld [vmem:[%s1145_s6 + $0x68] sm:$0xff] }
 0x151   :  { %v259_v27 = vpop.f32.mrf.mxu0 }
 0x152   :  { %v260_v3 = vadd.f32 %v259_v27, %v172_v63  ;;  %v479_v27 = vpack.c.bf16 %v470_v26, %v469_v24  ;;  %v632_v26 = vld [vmem:[%s1147_s8] ss:$0 sm:$0xff] }
 0x153   :  { %v679_v28 = vpop.f32.mrf.mxu0 }
 0x154   :  { %v271_v59 = vadd.f32 %v679_v28, %v175_v56  ;;  %v467_v28 = vld [vmem:[%s1145_s6 + $0x50] sm:$0xff] }
 0x155   :  { %v262_v29 = vpop.f32.mrf.mxu0 }
 0x156   :  { %v309_v0 = vpack.c.bf16 %v271_v59, %v268_v62  ;;  %v263_v1 = vadd.f32 %v262_v29, %v173_v61  ;;  %v468_v29 = vld [vmem:[%s1145_s6 + $0x58] sm:$0xff]  ;;  %v631_v61 = vld [vmem:[%s1146_s7] ss:$0 sm:$0xff]  ;;  %s785_s7 = smov [#allocation3]  }
 0x157   :  { %v682_v30 = vpop.f32.mrf.mxu0  ;;  %s590_s14 = sshll.u32 %s785_s7, 4  ;;  %s591_s14 = int_to_ptr.vmem [resolvable:$true] %s590_s14 }
 0x158   :  { %v284_v52 = vadd.f32 %v682_v30, %v178_v48  ;;  %v308_v8 = vpack.c.bf16 %v263_v1, %v260_v3  ;;  %v478_v30 = vpack.c.bf16 %v468_v29, %v467_v28  ;;  %v457_v48 = vld [vmem:[%s1145_s6] sm:$0xff]  ;;  %s759_s17 = scalar_lea.vmem %s591_s14, 256  ;;  %p764_p1 = scmp.lt.s32.totalorder %s591_s14, %s591_s14 }
 0x159   :  { %v275_v31 = vpop.f32.mrf.mxu0  ;;  %v633_v29 = vld [vmem:[%s1148_s9] ss:$0 sm:$0xff]  ;;  %p760_p0 = scmp.ne.s32.totalorder %s591_s14, %s759_s17  ;;  %p765_p2 = scmp.lt.s32.totalorder %s759_s17, %s759_s17 }
 0x15a   :  { %v276_v57 = vadd.f32 %v275_v31, %v176_v53  ;;  %v465_v31 = vld [vmem:[%s1145_s6 + $0x40] sm:$0xff] }
 0x15b   :  { %v683_v32 = vpop.f32.mrf.mxu0  ;;  %p766_p3 = por %p765_p2, %p764_p1 }
 0x15c   :  { %v287_v49 = vadd.f32 %v683_v32, %v179_v46  ;;  %v466_v32 = vld [vmem:[%s1145_s6 + $0x48] sm:$0xff]  ;;  %v460_v46 = vld [vmem:[%s1145_s6 + $0x18] sm:$0xff] }
 0x15d   :  { %v278_v33 = vpop.f32.mrf.mxu0  ;;  %p767_p4 = pnand %p766_p3, %p760_p0 }
 0x15e   :  { %v311_v54 = vpack.c.bf16 %v287_v49, %v284_v52  ;;  %v279_v55 = vadd.f32 %v278_v33, %v177_v51  ;;  %v477_v33 = vpack.c.bf16 %v466_v32, %v465_v31  ;;  %v458_v49 = vld [vmem:[%s1145_s6 + $0x8] sm:$0xff]  ;;  %v630_v51 = vld [vmem:[%s1144_s5] ss:$0 sm:$0xff] }
 0x15f   :  { %v686_v34 = vpop.f32.mrf.mxu0 }
 0x160   :  { %v300_v40 = vadd.f32 %v686_v34, %v182_v35  ;;  %v310_v60 = vpack.c.bf16 %v279_v55, %v276_v57  ;;  %v463_v34 = vld [vmem:[%s1145_s6 + $0x30] sm:$0xff]  ;;  %v464_v35 = vld [vmem:[%s1145_s6 + $0x38] sm:$0xff] }
 0x161   :  { %v291_v36 = vpop.f32.mrf.mxu0 }
 0x162   :  { %v292_v47 = vadd.f32 %v291_v36, %v180_v42  ;;  %v476_v36 = vpack.c.bf16 %v464_v35, %v463_v34  ;;  %v461_v42 = vld [vmem:[%s1145_s6 + $0x20] sm:$0xff] }
 0x163   :  { %v687_v38 = vpop.f32.mrf.mxu0 }
 0x164   :  { %v303_v41 = vadd.f32 %v687_v38, %v183_v37 }
 0x165   :  { %v294_v43 = vpop.f32.mrf.mxu0 }
 0x166   :  { %v295_v44 = vadd.f32 %v294_v43, %v181_v39  ;;  %v313_v45 = vpack.c.bf16 %v303_v41, %v300_v40  ;;  %v462_v43 = vld [vmem:[%s1145_s6 + $0x28] sm:$0xff] }
 0x168   :  { %689 = vmatpush3.bf16.msra.mxu1 %v313_v45  ;;  %v312_v50 = vpack.c.bf16 %v295_v44, %v292_v47  ;;  %v475_v44 = vpack.c.bf16 %v462_v43, %v461_v42  ;;  %v459_v45 = vld [vmem:[%s1145_s6 + $0x10] sm:$0xff] }
 0x169   :  { %690 = vmatprep.subr.bf16.mxu1 %v782_v5  ;;  %v474_v47 = vpack.c.bf16 %v460_v46, %v459_v45 }
 0x16c   :  { %691 = vmatpush3.bf16.msra.mxu1 %v312_v50  ;;  %v473_v50 = vpack.c.bf16 %v458_v49, %v457_v48 }
 0x16d   :  { %692 = vmatprep.subr.bf16.mxu1 %v782_v5 }
 0x170   :  { %693 = vmatpush3.bf16.msra.mxu1 %v311_v54 }
 0x171   :  { %694 = vmatprep.subr.bf16.mxu1 %v782_v5 }
 0x174   :  { %695 = vmatpush3.bf16.msra.mxu1 %v310_v60 }
 0x175   :  { %696 = vmatprep.subr.bf16.mxu1 %v782_v5 }
 0x178   :  { %697 = vmatpush3.bf16.msra.mxu1 %v309_v0 }
 0x179   :  { %698 = vmatprep.subr.bf16.mxu1 %v782_v5 }
 0x17c   :  { %699 = vmatpush3.bf16.msra.mxu1 %v308_v8 }
 0x17d   :  { %700 = vmatprep.subr.bf16.mxu1 %v782_v5 }
 0x180   :  { %701 = vmatpush3.bf16.msra.mxu1 %v307_v13 }
 0x181   :  { %702 = vmatprep.subr.bf16.mxu1 %v782_v5 }
 0x184   :  { %703 = vmatpush3.bf16.msra.mxu1 %v306_v16 }
 0x185   :  { %728 = vmatprep.subr.bf16.mxu1 %v782_v5 }
 0x187   :  { %705 = vmatmul.mubr.msk.bf16.vlgmr.msra.gmra.mxu1 %vm628_vm4, %v784_v17 }
 0x188   :  { %744 = vmatprep.mubr.msk.bf16.mxu1 %vm783_vm1, %v782_v5  ;;  %729 = vmatpush3.bf16.msra.mxu1 %v480_v25 }
 0x189   :  { %730 = vmatprep.subr.bf16.mxu1 %v782_v5 }
 0x18c   :  { %731 = vmatpush3.bf16.msra.mxu1 %v479_v27 }
 0x18d   :  { %732 = vmatprep.subr.bf16.mxu1 %v782_v5 }
 0x190   :  { %733 = vmatpush3.bf16.msra.mxu1 %v478_v30 }
 0x191   :  { %734 = vmatprep.subr.bf16.mxu1 %v782_v5 }
 0x194   :  { %735 = vmatpush3.bf16.msra.mxu1 %v477_v33 }
 0x195   :  { %736 = vmatprep.subr.bf16.mxu1 %v782_v5 }
 0x198   :  { %737 = vmatpush3.bf16.msra.mxu1 %v476_v36 }
 0x199   :  { %738 = vmatprep.subr.bf16.mxu1 %v782_v5 }
 0x19c   :  { %739 = vmatpush3.bf16.msra.mxu1 %v475_v44 }
 0x19d   :  { %740 = vmatprep.subr.bf16.mxu1 %v782_v5 }
 0x1a0   :  { %741 = vmatpush3.bf16.msra.mxu1 %v474_v47 }
 0x1a1   :  { %742 = vmatprep.subr.bf16.mxu1 %v782_v5 }
 0x1a4   :  { %743 = vmatpush3.bf16.msra.mxu1 %v473_v50 }
 0x247   :  { %v365_v37 = vpop.f32.mrf.mxu1 }
 0x249   :  { %v706_v38 = vpop.f32.mrf.mxu1 }
 0x24b   :  { %v368_v39 = vpop.f32.mrf.mxu1 }
 0x24c   :  { %v381_v40 = vpack.c.bf16 %v368_v39, %v365_v37 }
 0x24d   :  { %v707_v41 = vpop.f32.mrf.mxu1 }
 0x24e   :  { %725 = vmatmul.mubr.bf16.vlgmr.msra.gmra.mxu0 %v381_v40 }
 0x30e   :  { %v447_v52 = vpop.f32.mrf.mxu0 }
 0x30f   :  { %v448_v54 = vadd.f32 %v630_v51, %v447_v52 }
 0x310   :  { %v726_v53 = vpop.f32.mrf.mxu0 }
 0x311   :  { %v454_v57 = vmax.f32 %v448_v54, 0.0 }
 0x312   :  { %v450_v55 = vpop.f32.mrf.mxu0 }
 0x313   :  { %v451_v56 = vadd.f32 %v630_v51, %v450_v55 }
 0x314   :  { %v727_v5 = vpop.f32.mrf.mxu0 }
 0x315   :  { %v455_v58 = vmax.f32 %v451_v56, 0.0 }
 0x317   :  { %v456_v59 = vpack.c.bf16 %v455_v58, %v454_v57 }
 0x319   :  { %745 = vmatmul.mubr.bf16.vlgmr.msra.gmra.mxu1 %v456_v59 }
 0x3d9   :  { %v522_v60 = vpop.f32.mrf.mxu1 }
 0x3da   :  { %v523_v0 = vadd.f32 %v631_v61, %v522_v60 }
 0x3db   :  { %v746_v62 = vpop.f32.mrf.mxu1 }
 0x3dd   :  { %v525_v63 = vpop.f32.mrf.mxu1 }
 0x3de   :  { %v526_v1 = vadd.f32 %v631_v61, %v525_v63 }
 0x3df   :  { %v747_v2 = vpop.f32.mrf.mxu1 }
 0x3e0   :  { %v537_v3 = vadd.f32 %v526_v1, %v523_v0 }
 0x3e2   :  { %v538_v4 = vrot.slane %v537_v3, 4 }
 0x3e4   :  { %v539_v6 = vadd.f32 %v538_v4, %v537_v3 }
 0x3e6   :  { %v540_v7 = vrot.slane %v539_v6, 2 }
 0x3e8   :  { %v541_v8 = vadd.f32 %v540_v7, %v539_v6 }
 0x3ea   :  { %v542_v9 = vrot.slane %v541_v8, 1 }
 0x3ec   :  { %v543_v10 = vadd.f32 %v542_v9, %v541_v8 }
 0x3ee   :  { %v544_v11 = vmul.f32 0.0625, %v543_v10 }
 0x3f0   :  { %v545_v12 = vsub.f32 %v523_v0, %v544_v11  ;;  %v546_v13 = vsub.f32 %v526_v1, %v544_v11 }
 0x3f2   :  { %v549_v14 = vmul.f32 %v545_v12, %v545_v12  ;;  %v550_v21 = vmul.f32 %v546_v13, %v546_v13 }
 0x3f4   :  { %v551_v15 = vadd.f32 %v550_v21, %v549_v14 }
 0x3f6   :  { %v552_v16 = vrot.slane %v551_v15, 4 }
 0x3f8   :  { %v553_v17 = vadd.f32 %v552_v16, %v551_v15 }
 0x3fa   :  { %v554_v18 = vrot.slane %v553_v17, 2 }
 0x3fc   :  { %v555_v19 = vadd.f32 %v554_v18, %v553_v17 }
 0x3fe   :  { %v556_v20 = vrot.slane %v555_v19, 1 }
 0x400   :  { %v557_v22 = vadd.f32 %v556_v20, %v555_v19 }
 0x402   :  { %v558_v23 = vmul.f32 0.0625, %v557_v22 }
 0x404   :  { %v559_v24 = vadd.f32 1e-05, %v558_v23 }
 0x406   :  { %757 = vrsqrt.f32 %v559_v24 }
 0x413   :  { %v758_v25 = vpop.eup %757 }
 0x414   :  { %v561_v27 = vmul.f32 %v758_v25, %v545_v12  ;;  %v562_v28 = vmul.f32 %v758_v25, %v546_v13 }
 0x416   :  { %v570_v30 = vmul.f32 %v632_v26, %v561_v27  ;;  %v571_v31 = vmul.f32 %v632_v26, %v562_v28 }
 0x418   :  { %v580_v32 = vadd.f32 %v633_v29, %v571_v31  ;;  %v579_v33 = vadd.f32 %v633_v29, %v570_v30 }
 0x41a   :  { %584 = vst [vmem:[#allocation3 + $0x8] sm:$0xff] %v580_v32  ;;  %583 = vst [vmem:[#allocation3] sm:$0xff] %v579_v33 }
 0x41b   :  { %770 = shalt.err (!%p767_p4)
}
 0x41c   :  { %s786_s8 = smov 128   ;;  %s787_s18 = smov 8  }
 0x41d   :  { %596 = dma.vmem_to_hbm [thread:$0]  %s591_s14, 256, %s1149_s10, [#allocation4], %s786_s8, %s786_s8, %s787_s18  }
 0x41e   :  { %779 = dma.done.wait [#allocation4], 256  }
 0x41f   :  { %780 = vsyncadd [#allocation4], 4294967040 }
 0x420   :  { %600 = vsyncpa [#allocation4], 1 }

</bundles_post_ra>
